<compile_context>
chip_gen: v7x
topology: tpu7x:2x2x1
jax: 0.10.0
libtpu: 0.0.40
codegen_flags: <defaults>
</compile_context>

<pallas_src>
import functools
import math

import jax
import jax.numpy as jnp
from jax.experimental import pallas as pl
from jax.experimental.pallas import tpu as pltpu

# ----------------------- synthetic model config -----------------------
VOCAB = 64
MAX_POS = 16
TYPE_VOCAB = 2
HIDDEN = 32
NUM_HEADS = 2
HEAD_DIM = HIDDEN // NUM_HEADS
INTERMEDIATE = 64
NUM_LAYERS = 2
NUM_HATE = 2
NUM_TOPICS = 5            # synthetic stand-in for len(df['Topic'].unique())
NUM_CLS = NUM_HATE + NUM_TOPICS
LN_EPS = 1e-12            # HF BERT layer-norm eps
ATTN_SCALE = 1.0 / math.sqrt(HEAD_DIM)

_LAYER_KEYS = ("wqkv", "bqkv", "wo", "bo", "ln1_g", "ln1_b",
               "w1", "b1", "w2", "b2", "ln2_g", "ln2_b")
_REFS_PER_LAYER = len(_LAYER_KEYS)


# -------------------------- in-kernel helpers --------------------------

def _layernorm(x, g, b):
    mu = jnp.mean(x, axis=-1, keepdims=True)
    var = jnp.mean(jnp.square(x - mu), axis=-1, keepdims=True)
    return (x - mu) * jax.lax.rsqrt(var + LN_EPS) * g + b


def _gelu(x):
    # TODO(synk): HF BERT/AraBERT default to the exact erf GELU; tanh approx used here.
    return 0.5 * x * (1.0 + jnp.tanh(0.7978845608028654 * (x + 0.044715 * x * x * x)))


def _bf16(x):
    return x.astype(jnp.bfloat16)


# ----------------------- single fused forward kernel -------------------
# All weights (<100 KB synthetic; ~a few MB per layer even for real AraBERT in
# bf16) fit in VMEM, so the whole forward runs in one kernel invocation.

def _fused_forward_kernel(emb_ref, mask_ref, emb_g_ref, emb_b_ref, *rest,
                          batch, seq):
    n_layer_refs = NUM_LAYERS * _REFS_PER_LAYER
    layer_refs = rest[:n_layer_refs]
    head_w_ref = rest[n_layer_refs]
    head_b_ref = rest[n_layer_refs + 1]
    out_ref = rest[n_layer_refs + 2]
    attn_scr = rest[n_layer_refs + 3]        # VMEM scratch (B*S, H) f32

    B, S, H = batch, seq, HIDDEN
    f32 = jnp.float32

    # Embedding layernorm (pure LN: no zero-residual tensor is DMA'd).
    x = _layernorm(emb_ref[...].astype(f32), emb_g_ref[...], emb_b_ref[...])
    addmask = mask_ref[...].astype(f32)                         # (B, S) additive

    for layer in range(NUM_LAYERS):
        base = layer * _REFS_PER_LAYER
        (wqkv, bqkv, wo, bo, ln1g, ln1b,
         w1, b1, w2, b2, ln2g, ln2b) = layer_refs[base:base + _REFS_PER_LAYER]

        # Fused Q|K|V projection: one bf16 MXU GEMM, f32 accumulate.
        qkv = jnp.dot(_bf16(x), wqkv[...],
                      preferred_element_type=f32) + bqkv[...]   # (B*S, 3H)
        wo_v = wo[...]                                          # (H, H) bf16

        # Attention: statically unrolled over (batch, head); tiny 2-D dots only,
        # static slices only (no in-kernel transpose / reshape / concatenate).
        for b in range(B):
            mask_b = addmask[b:b + 1, :]                        # (1, S)
            acc = None
            for h in range(NUM_HEADS):
                c0 = h * HEAD_DIM
                q = qkv[b * S:(b + 1) * S, c0:c0 + HEAD_DIM]
                k = qkv[b * S:(b + 1) * S, H + c0:H + c0 + HEAD_DIM]
                v = qkv[b * S:(b + 1) * S, 2 * H + c0:2 * H + c0 + HEAD_DIM]
                # Contract the head dims directly (no explicit K transpose).
                s = jax.lax.dot_general(
                    _bf16(q), _bf16(k), (((1,), (1,)), ((), ())),
                    preferred_element_type=f32)                 # (S, S)
                s = s * ATTN_SCALE + mask_b
                s = s - jnp.max(s, axis=-1, keepdims=True)
                p = jnp.exp(s)
                p = p * pl.reciprocal(jnp.sum(p, axis=-1, keepdims=True),
                                      approx=True)
                ctx = jnp.dot(_bf16(p), _bf16(v),
                              preferred_element_type=f32)       # (S, dh)
                # concat_h(ctx_h) @ W_O == sum_h ctx_h @ W_O[h*dh:(h+1)*dh, :]
                part = jnp.dot(_bf16(ctx), wo_v[c0:c0 + HEAD_DIM, :],
                               preferred_element_type=f32)      # (S, H)
                acc = part if acc is None else acc + part
            attn_scr[b * S:(b + 1) * S, :] = acc

        attn_out = attn_scr[...] + bo[...]
        x = _layernorm(attn_out + x, ln1g[...], ln1b[...])

        # FFN: bf16 GEMMs on the MXU, f32 elementwise (GELU) math.
        hmid = jnp.dot(_bf16(x), w1[...], preferred_element_type=f32) + b1[...]
        hmid = _gelu(hmid)
        ffn = jnp.dot(_bf16(hmid), w2[...], preferred_element_type=f32) + b2[...]
        x = _layernorm(ffn + x, ln2g[...], ln2b[...])

    # Fused classification heads [hate(2) | topic(NUM_TOPICS)]; store CLS rows.
    logits_all = jnp.dot(_bf16(x), head_w_ref[...],
                         preferred_element_type=f32) + head_b_ref[...]
    for b in range(B):
        out_ref[b:b + 1, :] = logits_all[b * S:b * S + 1, :].astype(out_ref.dtype)


# --------------------------- parameter init ---------------------------

def init_params(key):
    def nrm(k, shape, dtype=jnp.float32):
        return (0.02 * jax.random.normal(k, shape, dtype=jnp.float32)).astype(dtype)

    keys = iter(jax.random.split(key, 64))
    ones = jnp.ones((1, HIDDEN), jnp.float32)
    zeros_h = jnp.zeros((1, HIDDEN), jnp.float32)

    params = {
        "word_emb": nrm(next(keys), (VOCAB, HIDDEN)),
        "pos_emb": nrm(next(keys), (MAX_POS, HIDDEN)),
        "type_emb": nrm(next(keys), (TYPE_VOCAB, HIDDEN)),
        "emb_ln_g": ones, "emb_ln_b": zeros_h,
        "layers": [],
        # Fused classification heads: columns [hate(2) | topic(NUM_TOPICS)].
        "head_w": nrm(next(keys), (HIDDEN, NUM_CLS), jnp.bfloat16),
        "head_b": jnp.zeros((1, NUM_CLS), jnp.float32),
    }
    for _ in range(NUM_LAYERS):
        params["layers"].append({
            # Fused QKV weight: columns [Q | K | V], bf16 for the MXU.
            "wqkv": nrm(next(keys), (HIDDEN, 3 * HIDDEN), jnp.bfloat16),
            "bqkv": jnp.zeros((1, 3 * HIDDEN), jnp.float32),
            "wo": nrm(next(keys), (HIDDEN, HIDDEN), jnp.bfloat16),
            "bo": zeros_h,
            "ln1_g": ones, "ln1_b": zeros_h,
            "w1": nrm(next(keys), (HIDDEN, INTERMEDIATE), jnp.bfloat16),
            "b1": jnp.zeros((1, INTERMEDIATE), jnp.float32),
            "w2": nrm(next(keys), (INTERMEDIATE, HIDDEN), jnp.bfloat16),
            "b2": zeros_h,
            "ln2_g": ones, "ln2_b": zeros_h,
        })
    return params


# ----------------------------- forward --------------------------------

def multitask_forward(params, input_ids, attention_mask):
    B, S = input_ids.shape

    # Embedding gathers are XLA glue; the embedding LayerNorm runs in-kernel.
    we = jnp.take(params["word_emb"], input_ids, axis=0)        # (B, S, H)
    pe = params["pos_emb"][:S][None, :, :]                      # (1, S, H)
    te = params["type_emb"][0][None, None, :]                   # token_type_ids = 0
    emb = (we + pe + te).reshape(B * S, HIDDEN)

    # Additive padding mask kept at (B, S); broadcast per head inside the kernel.
    addmask = (1.0 - attention_mask.astype(jnp.float32)) * -1e9

    flat_layers = [params["layers"][l][k]
                   for l in range(NUM_LAYERS) for k in _LAYER_KEYS]
    args = [emb, addmask, params["emb_ln_g"], params["emb_ln_b"],
            *flat_layers, params["head_w"], params["head_b"]]

    logits = pl.pallas_call(
        functools.partial(_fused_forward_kernel, batch=B, seq=S),
        out_shape=jax.ShapeDtypeStruct((B, NUM_CLS), jnp.float32),
        scratch_shapes=[pltpu.VMEM((B * S, HIDDEN), jnp.float32)],
    )(*args)

    hate_speech_logits = logits[:, :NUM_HATE]
    topic_logits = logits[:, NUM_HATE:]
    return hate_speech_logits, topic_logits


# ------------------------------ main -----------------------------------

if __name__ == "__main__":
    # TODO(synk): real AraBERT checkpoint / Excel-derived num_topics cannot be
    # loaded here; synthetic deterministic weights with the same structure are used.
    key = jax.random.PRNGKey(0)
    pkey, ikey = jax.random.split(key)
    params = init_params(pkey)

    B, S = 2, 8
    input_ids = jax.random.randint(ikey, (B, S), 0, VOCAB, dtype=jnp.int32)
    attention_mask = jnp.array([[1, 1, 1, 1, 1, 1, 1, 1],
                                [1, 1, 1, 1, 1, 1, 0, 0]], dtype=jnp.int32)

    fwd = jax.jit(functools.partial(multitask_forward, params))
    hate_logits, topic_logits = fwd(input_ids, attention_mask)
    jax.block_until_ready((hate_logits, topic_logits))

    assert hate_logits.shape == (B, NUM_HATE)
    assert topic_logits.shape == (B, NUM_TOPICS)
    assert bool(jnp.all(jnp.isfinite(hate_logits))) and bool(jnp.all(jnp.isfinite(topic_logits)))
    print("KERNEL_OK")
</pallas_src>

<mosaic_0001>
module attributes {stable_mosaic.version = 11 : i64} {
  func.func @_fused_forward_kernel(%arg0: memref<16x32xf32, #tpu.memory_space<vmem>>, %arg1: memref<2x8xf32, #tpu.memory_space<vmem>>, %arg2: memref<1x32xf32, #tpu.memory_space<vmem>>, %arg3: memref<1x32xf32, #tpu.memory_space<vmem>>, %arg4: memref<32x96xbf16, #tpu.memory_space<vmem>>, %arg5: memref<1x96xf32, #tpu.memory_space<vmem>>, %arg6: memref<32x32xbf16, #tpu.memory_space<vmem>>, %arg7: memref<1x32xf32, #tpu.memory_space<vmem>>, %arg8: memref<1x32xf32, #tpu.memory_space<vmem>>, %arg9: memref<1x32xf32, #tpu.memory_space<vmem>>, %arg10: memref<32x64xbf16, #tpu.memory_space<vmem>>, %arg11: memref<1x64xf32, #tpu.memory_space<vmem>>, %arg12: memref<64x32xbf16, #tpu.memory_space<vmem>>, %arg13: memref<1x32xf32, #tpu.memory_space<vmem>>, %arg14: memref<1x32xf32, #tpu.memory_space<vmem>>, %arg15: memref<1x32xf32, #tpu.memory_space<vmem>>, %arg16: memref<32x96xbf16, #tpu.memory_space<vmem>>, %arg17: memref<1x96xf32, #tpu.memory_space<vmem>>, %arg18: memref<32x32xbf16, #tpu.memory_space<vmem>>, %arg19: memref<1x32xf32, #tpu.memory_space<vmem>>, %arg20: memref<1x32xf32, #tpu.memory_space<vmem>>, %arg21: memref<1x32xf32, #tpu.memory_space<vmem>>, %arg22: memref<32x64xbf16, #tpu.memory_space<vmem>>, %arg23: memref<1x64xf32, #tpu.memory_space<vmem>>, %arg24: memref<64x32xbf16, #tpu.memory_space<vmem>>, %arg25: memref<1x32xf32, #tpu.memory_space<vmem>>, %arg26: memref<1x32xf32, #tpu.memory_space<vmem>>, %arg27: memref<1x32xf32, #tpu.memory_space<vmem>>, %arg28: memref<32x7xbf16, #tpu.memory_space<vmem>>, %arg29: memref<1x7xf32, #tpu.memory_space<vmem>>, %arg30: memref<2x7xf32, #tpu.memory_space<vmem>>, %arg31: memref<16x32xf32, #tpu.memory_space<vmem>>) attributes {dimension_semantics = [], scalar_prefetch = 0 : i64, scratch_operands = 1 : i64, tpu.core_type = #tpu.core_type<tc>} {
    %c0 = arith.constant 0 : index
    %c0_0 = arith.constant 0 : index
    %0 = vector.load %arg0[%c0, %c0_0] : memref<16x32xf32, #tpu.memory_space<vmem>>, vector<16x32xf32>
    %c0_1 = arith.constant 0 : index
    %c0_2 = arith.constant 0 : index
    %1 = vector.load %arg2[%c0_1, %c0_2] : memref<1x32xf32, #tpu.memory_space<vmem>>, vector<1x32xf32>
    %c0_3 = arith.constant 0 : index
    %c0_4 = arith.constant 0 : index
    %2 = vector.load %arg3[%c0_3, %c0_4] : memref<1x32xf32, #tpu.memory_space<vmem>>, vector<1x32xf32>
    %cst = arith.constant dense<0.000000e+00> : vector<16xf32>
    %3 = vector.multi_reduction <add>, %0, %cst [1] : vector<16x32xf32> to vector<16xf32>
    %4 = vector.shape_cast %3 : vector<16xf32> to vector<16x1xf32>
    %cst_5 = arith.constant 3.200000e+01 : f32
    %5 = vector.broadcast %cst_5 : f32 to vector<16x1xf32>
    %6 = arith.divf %4, %5 : vector<16x1xf32>
    %7 = vector.broadcast %6 : vector<16x1xf32> to vector<16x32xf32>
    %8 = arith.subf %0, %7 : vector<16x32xf32>
    %9 = arith.mulf %8, %8 : vector<16x32xf32>
    %cst_6 = arith.constant dense<0.000000e+00> : vector<16xf32>
    %10 = vector.multi_reduction <add>, %9, %cst_6 [1] : vector<16x32xf32> to vector<16xf32>
    %11 = vector.shape_cast %10 : vector<16xf32> to vector<16x1xf32>
    %cst_7 = arith.constant 3.200000e+01 : f32
    %12 = vector.broadcast %cst_7 : f32 to vector<16x1xf32>
    %13 = arith.divf %11, %12 : vector<16x1xf32>
    %14 = vector.broadcast %6 : vector<16x1xf32> to vector<16x32xf32>
    %15 = arith.subf %0, %14 : vector<16x32xf32>
    %cst_8 = arith.constant 9.99999996E-13 : f32
    %16 = vector.broadcast %cst_8 : f32 to vector<16x1xf32>
    %17 = arith.addf %13, %16 : vector<16x1xf32>
    %18 = math.rsqrt %17 : vector<16x1xf32>
    %19 = vector.broadcast %18 : vector<16x1xf32> to vector<16x32xf32>
    %20 = arith.mulf %15, %19 : vector<16x32xf32>
    %21 = vector.broadcast %1 : vector<1x32xf32> to vector<16x32xf32>
    %22 = arith.mulf %20, %21 : vector<16x32xf32>
    %23 = vector.broadcast %2 : vector<1x32xf32> to vector<16x32xf32>
    %24 = arith.addf %22, %23 : vector<16x32xf32>
    %c0_9 = arith.constant 0 : index
    %c0_10 = arith.constant 0 : index
    %25 = vector.load %arg1[%c0_9, %c0_10] : memref<2x8xf32, #tpu.memory_space<vmem>>, vector<2x8xf32>
    %26 = arith.truncf %24 : vector<16x32xf32> to vector<16x32xbf16>
    %c0_11 = arith.constant 0 : index
    %c0_12 = arith.constant 0 : index
    %27 = vector.load %arg4[%c0_11, %c0_12] : memref<32x96xbf16, #tpu.memory_space<vmem>>, vector<32x96xbf16>
    %cst_13 = arith.constant dense<0.000000e+00> : vector<16x96xf32>
    %28 = tpu.matmul %26, %27, %cst_13 {dimension_numbers = #tpu.dot_dimension_numbers<[1], [0], [0], [1], [0, 0, 1, 1], [], []>} : vector<16x32xbf16>, vector<32x96xbf16>, vector<16x96xf32> -> vector<16x96xf32>
    %c0_14 = arith.constant 0 : index
    %c0_15 = arith.constant 0 : index
    %29 = vector.load %arg5[%c0_14, %c0_15] : memref<1x96xf32, #tpu.memory_space<vmem>>, vector<1x96xf32>
    %30 = vector.broadcast %29 : vector<1x96xf32> to vector<16x96xf32>
    %31 = arith.addf %28, %30 : vector<16x96xf32>
    %c0_16 = arith.constant 0 : index
    %c0_17 = arith.constant 0 : index
    %32 = vector.load %arg6[%c0_16, %c0_17] : memref<32x32xbf16, #tpu.memory_space<vmem>>, vector<32x32xbf16>
    %33 = vector.extract_strided_slice %25 {offsets = [0, 0], sizes = [1, 8], strides = [1, 1]} : vector<2x8xf32> to vector<1x8xf32>
    %34 = vector.extract_strided_slice %31 {offsets = [0, 0], sizes = [8, 16], strides = [1, 1]} : vector<16x96xf32> to vector<8x16xf32>
    %35 = vector.extract_strided_slice %31 {offsets = [0, 32], sizes = [8, 16], strides = [1, 1]} : vector<16x96xf32> to vector<8x16xf32>
    %36 = vector.extract_strided_slice %31 {offsets = [0, 64], sizes = [8, 16], strides = [1, 1]} : vector<16x96xf32> to vector<8x16xf32>
    %37 = arith.truncf %34 : vector<8x16xf32> to vector<8x16xbf16>
    %38 = arith.truncf %35 : vector<8x16xf32> to vector<8x16xbf16>
    %cst_18 = arith.constant dense<0.000000e+00> : vector<8x8xf32>
    %39 = tpu.matmul %37, %38, %cst_18 {dimension_numbers = #tpu.dot_dimension_numbers<[1], [1], [0], [0], [0, 0, 1, 0], [], []>} : vector<8x16xbf16>, vector<8x16xbf16>, vector<8x8xf32> -> vector<8x8xf32>
    %cst_19 = arith.constant 2.500000e-01 : f32
    %40 = vector.broadcast %cst_19 : f32 to vector<8x8xf32>
    %41 = arith.mulf %39, %40 : vector<8x8xf32>
    %42 = vector.broadcast %33 : vector<1x8xf32> to vector<8x8xf32>
    %43 = arith.addf %41, %42 : vector<8x8xf32>
    %cst_20 = arith.constant dense<0xFF800000> : vector<8xf32>
    %44 = vector.multi_reduction <maximumf>, %43, %cst_20 [1] : vector<8x8xf32> to vector<8xf32>
    %45 = vector.shape_cast %44 : vector<8xf32> to vector<8x1xf32>
    %46 = vector.broadcast %45 : vector<8x1xf32> to vector<8x8xf32>
    %47 = arith.subf %43, %46 : vector<8x8xf32>
    %48 = math.exp %47 : vector<8x8xf32>
    %cst_21 = arith.constant dense<0.000000e+00> : vector<8xf32>
    %49 = vector.multi_reduction <add>, %48, %cst_21 [1] : vector<8x8xf32> to vector<8xf32>
    %50 = vector.shape_cast %49 : vector<8xf32> to vector<8x1xf32>
    %51 = tpu.reciprocal %50 {approx = true} : vector<8x1xf32> -> vector<8x1xf32>
    %52 = vector.broadcast %51 : vector<8x1xf32> to vector<8x8xf32>
    %53 = arith.mulf %48, %52 : vector<8x8xf32>
    %54 = arith.truncf %53 : vector<8x8xf32> to vector<8x8xbf16>
    %55 = arith.truncf %36 : vector<8x16xf32> to vector<8x16xbf16>
    %cst_22 = arith.constant dense<0.000000e+00> : vector<8x16xf32>
    %56 = tpu.matmul %54, %55, %cst_22 {dimension_numbers = #tpu.dot_dimension_numbers<[1], [0], [0], [1], [0, 0, 1, 1], [], []>} : vector<8x8xbf16>, vector<8x16xbf16>, vector<8x16xf32> -> vector<8x16xf32>
    %57 = arith.truncf %56 : vector<8x16xf32> to vector<8x16xbf16>
    %58 = vector.extract_strided_slice %32 {offsets = [0, 0], sizes = [16, 32], strides = [1, 1]} : vector<32x32xbf16> to vector<16x32xbf16>
    %cst_23 = arith.constant dense<0.000000e+00> : vector<8x32xf32>
    %59 = tpu.matmul %57, %58, %cst_23 {dimension_numbers = #tpu.dot_dimension_numbers<[1], [0], [0], [1], [0, 0, 1, 1], [], []>} : vector<8x16xbf16>, vector<16x32xbf16>, vector<8x32xf32> -> vector<8x32xf32>
    %60 = vector.extract_strided_slice %31 {offsets = [0, 16], sizes = [8, 16], strides = [1, 1]} : vector<16x96xf32> to vector<8x16xf32>
    %61 = vector.extract_strided_slice %31 {offsets = [0, 48], sizes = [8, 16], strides = [1, 1]} : vector<16x96xf32> to vector<8x16xf32>
    %62 = vector.extract_strided_slice %31 {offsets = [0, 80], sizes = [8, 16], strides = [1, 1]} : vector<16x96xf32> to vector<8x16xf32>
    %63 = arith.truncf %60 : vector<8x16xf32> to vector<8x16xbf16>
    %64 = arith.truncf %61 : vector<8x16xf32> to vector<8x16xbf16>
    %cst_24 = arith.constant dense<0.000000e+00> : vector<8x8xf32>
    %65 = tpu.matmul %63, %64, %cst_24 {dimension_numbers = #tpu.dot_dimension_numbers<[1], [1], [0], [0], [0, 0, 1, 0], [], []>} : vector<8x16xbf16>, vector<8x16xbf16>, vector<8x8xf32> -> vector<8x8xf32>
    %cst_25 = arith.constant 2.500000e-01 : f32
    %66 = vector.broadcast %cst_25 : f32 to vector<8x8xf32>
    %67 = arith.mulf %65, %66 : vector<8x8xf32>
    %68 = vector.broadcast %33 : vector<1x8xf32> to vector<8x8xf32>
    %69 = arith.addf %67, %68 : vector<8x8xf32>
    %cst_26 = arith.constant dense<0xFF800000> : vector<8xf32>
    %70 = vector.multi_reduction <maximumf>, %69, %cst_26 [1] : vector<8x8xf32> to vector<8xf32>
    %71 = vector.shape_cast %70 : vector<8xf32> to vector<8x1xf32>
    %72 = vector.broadcast %71 : vector<8x1xf32> to vector<8x8xf32>
    %73 = arith.subf %69, %72 : vector<8x8xf32>
    %74 = math.exp %73 : vector<8x8xf32>
    %cst_27 = arith.constant dense<0.000000e+00> : vector<8xf32>
    %75 = vector.multi_reduction <add>, %74, %cst_27 [1] : vector<8x8xf32> to vector<8xf32>
    %76 = vector.shape_cast %75 : vector<8xf32> to vector<8x1xf32>
    %77 = tpu.reciprocal %76 {approx = true} : vector<8x1xf32> -> vector<8x1xf32>
    %78 = vector.broadcast %77 : vector<8x1xf32> to vector<8x8xf32>
    %79 = arith.mulf %74, %78 : vector<8x8xf32>
    %80 = arith.truncf %79 : vector<8x8xf32> to vector<8x8xbf16>
    %81 = arith.truncf %62 : vector<8x16xf32> to vector<8x16xbf16>
    %cst_28 = arith.constant dense<0.000000e+00> : vector<8x16xf32>
    %82 = tpu.matmul %80, %81, %cst_28 {dimension_numbers = #tpu.dot_dimension_numbers<[1], [0], [0], [1], [0, 0, 1, 1], [], []>} : vector<8x8xbf16>, vector<8x16xbf16>, vector<8x16xf32> -> vector<8x16xf32>
    %83 = arith.truncf %82 : vector<8x16xf32> to vector<8x16xbf16>
    %84 = vector.extract_strided_slice %32 {offsets = [16, 0], sizes = [16, 32], strides = [1, 1]} : vector<32x32xbf16> to vector<16x32xbf16>
    %cst_29 = arith.constant dense<0.000000e+00> : vector<8x32xf32>
    %85 = tpu.matmul %83, %84, %cst_29 {dimension_numbers = #tpu.dot_dimension_numbers<[1], [0], [0], [1], [0, 0, 1, 1], [], []>} : vector<8x16xbf16>, vector<16x32xbf16>, vector<8x32xf32> -> vector<8x32xf32>
    %86 = arith.addf %59, %85 : vector<8x32xf32>
    %c0_30 = arith.constant 0 : index
    %c0_31 = arith.constant 0 : index
    %87 = vector.load %arg31[%c0_30, %c0_31] : memref<16x32xf32, #tpu.memory_space<vmem>>, vector<8x32xf32>
    tpu.vector_store %arg31[%c0_30, %c0_31], %86 {strides = array<i32>} : memref<16x32xf32, #tpu.memory_space<vmem>>, vector<8x32xf32>,
    %88 = vector.extract_strided_slice %25 {offsets = [1, 0], sizes = [1, 8], strides = [1, 1]} : vector<2x8xf32> to vector<1x8xf32>
    %89 = vector.extract_strided_slice %31 {offsets = [8, 0], sizes = [8, 16], strides = [1, 1]} : vector<16x96xf32> to vector<8x16xf32>
    %90 = vector.extract_strided_slice %31 {offsets = [8, 32], sizes = [8, 16], strides = [1, 1]} : vector<16x96xf32> to vector<8x16xf32>
    %91 = vector.extract_strided_slice %31 {offsets = [8, 64], sizes = [8, 16], strides = [1, 1]} : vector<16x96xf32> to vector<8x16xf32>
    %92 = arith.truncf %89 : vector<8x16xf32> to vector<8x16xbf16>
    %93 = arith.truncf %90 : vector<8x16xf32> to vector<8x16xbf16>
    %cst_32 = arith.constant dense<0.000000e+00> : vector<8x8xf32>
    %94 = tpu.matmul %92, %93, %cst_32 {dimension_numbers = #tpu.dot_dimension_numbers<[1], [1], [0], [0], [0, 0, 1, 0], [], []>} : vector<8x16xbf16>, vector<8x16xbf16>, vector<8x8xf32> -> vector<8x8xf32>
    %cst_33 = arith.constant 2.500000e-01 : f32
    %95 = vector.broadcast %cst_33 : f32 to vector<8x8xf32>
    %96 = arith.mulf %94, %95 : vector<8x8xf32>
    %97 = vector.broadcast %88 : vector<1x8xf32> to vector<8x8xf32>
    %98 = arith.addf %96, %97 : vector<8x8xf32>
    %cst_34 = arith.constant dense<0xFF800000> : vector<8xf32>
    %99 = vector.multi_reduction <maximumf>, %98, %cst_34 [1] : vector<8x8xf32> to vector<8xf32>
    %100 = vector.shape_cast %99 : vector<8xf32> to vector<8x1xf32>
    %101 = vector.broadcast %100 : vector<8x1xf32> to vector<8x8xf32>
    %102 = arith.subf %98, %101 : vector<8x8xf32>
    %103 = math.exp %102 : vector<8x8xf32>
    %cst_35 = arith.constant dense<0.000000e+00> : vector<8xf32>
    %104 = vector.multi_reduction <add>, %103, %cst_35 [1] : vector<8x8xf32> to vector<8xf32>
    %105 = vector.shape_cast %104 : vector<8xf32> to vector<8x1xf32>
    %106 = tpu.reciprocal %105 {approx = true} : vector<8x1xf32> -> vector<8x1xf32>
    %107 = vector.broadcast %106 : vector<8x1xf32> to vector<8x8xf32>
    %108 = arith.mulf %103, %107 : vector<8x8xf32>
    %109 = arith.truncf %108 : vector<8x8xf32> to vector<8x8xbf16>
    %110 = arith.truncf %91 : vector<8x16xf32> to vector<8x16xbf16>
    %cst_36 = arith.constant dense<0.000000e+00> : vector<8x16xf32>
    %111 = tpu.matmul %109, %110, %cst_36 {dimension_numbers = #tpu.dot_dimension_numbers<[1], [0], [0], [1], [0, 0, 1, 1], [], []>} : vector<8x8xbf16>, vector<8x16xbf16>, vector<8x16xf32> -> vector<8x16xf32>
    %112 = arith.truncf %111 : vector<8x16xf32> to vector<8x16xbf16>
    %113 = vector.extract_strided_slice %32 {offsets = [0, 0], sizes = [16, 32], strides = [1, 1]} : vector<32x32xbf16> to vector<16x32xbf16>
    %cst_37 = arith.constant dense<0.000000e+00> : vector<8x32xf32>
    %114 = tpu.matmul %112, %113, %cst_37 {dimension_numbers = #tpu.dot_dimension_numbers<[1], [0], [0], [1], [0, 0, 1, 1], [], []>} : vector<8x16xbf16>, vector<16x32xbf16>, vector<8x32xf32> -> vector<8x32xf32>
    %115 = vector.extract_strided_slice %31 {offsets = [8, 16], sizes = [8, 16], strides = [1, 1]} : vector<16x96xf32> to vector<8x16xf32>
    %116 = vector.extract_strided_slice %31 {offsets = [8, 48], sizes = [8, 16], strides = [1, 1]} : vector<16x96xf32> to vector<8x16xf32>
    %117 = vector.extract_strided_slice %31 {offsets = [8, 80], sizes = [8, 16], strides = [1, 1]} : vector<16x96xf32> to vector<8x16xf32>
    %118 = arith.truncf %115 : vector<8x16xf32> to vector<8x16xbf16>
    %119 = arith.truncf %116 : vector<8x16xf32> to vector<8x16xbf16>
    %cst_38 = arith.constant dense<0.000000e+00> : vector<8x8xf32>
    %120 = tpu.matmul %118, %119, %cst_38 {dimension_numbers = #tpu.dot_dimension_numbers<[1], [1], [0], [0], [0, 0, 1, 0], [], []>} : vector<8x16xbf16>, vector<8x16xbf16>, vector<8x8xf32> -> vector<8x8xf32>
    %cst_39 = arith.constant 2.500000e-01 : f32
    %121 = vector.broadcast %cst_39 : f32 to vector<8x8xf32>
    %122 = arith.mulf %120, %121 : vector<8x8xf32>
    %123 = vector.broadcast %88 : vector<1x8xf32> to vector<8x8xf32>
    %124 = arith.addf %122, %123 : vector<8x8xf32>
    %cst_40 = arith.constant dense<0xFF800000> : vector<8xf32>
    %125 = vector.multi_reduction <maximumf>, %124, %cst_40 [1] : vector<8x8xf32> to vector<8xf32>
    %126 = vector.shape_cast %125 : vector<8xf32> to vector<8x1xf32>
    %127 = vector.broadcast %126 : vector<8x1xf32> to vector<8x8xf32>
    %128 = arith.subf %124, %127 : vector<8x8xf32>
    %129 = math.exp %128 : vector<8x8xf32>
    %cst_41 = arith.constant dense<0.000000e+00> : vector<8xf32>
    %130 = vector.multi_reduction <add>, %129, %cst_41 [1] : vector<8x8xf32> to vector<8xf32>
    %131 = vector.shape_cast %130 : vector<8xf32> to vector<8x1xf32>
    %132 = tpu.reciprocal %131 {approx = true} : vector<8x1xf32> -> vector<8x1xf32>
    %133 = vector.broadcast %132 : vector<8x1xf32> to vector<8x8xf32>
    %134 = arith.mulf %129, %133 : vector<8x8xf32>
    %135 = arith.truncf %134 : vector<8x8xf32> to vector<8x8xbf16>
    %136 = arith.truncf %117 : vector<8x16xf32> to vector<8x16xbf16>
    %cst_42 = arith.constant dense<0.000000e+00> : vector<8x16xf32>
    %137 = tpu.matmul %135, %136, %cst_42 {dimension_numbers = #tpu.dot_dimension_numbers<[1], [0], [0], [1], [0, 0, 1, 1], [], []>} : vector<8x8xbf16>, vector<8x16xbf16>, vector<8x16xf32> -> vector<8x16xf32>
    %138 = arith.truncf %137 : vector<8x16xf32> to vector<8x16xbf16>
    %139 = vector.extract_strided_slice %32 {offsets = [16, 0], sizes = [16, 32], strides = [1, 1]} : vector<32x32xbf16> to vector<16x32xbf16>
    %cst_43 = arith.constant dense<0.000000e+00> : vector<8x32xf32>
    %140 = tpu.matmul %138, %139, %cst_43 {dimension_numbers = #tpu.dot_dimension_numbers<[1], [0], [0], [1], [0, 0, 1, 1], [], []>} : vector<8x16xbf16>, vector<16x32xbf16>, vector<8x32xf32> -> vector<8x32xf32>
    %141 = arith.addf %114, %140 : vector<8x32xf32>
    %c8 = arith.constant 8 : index
    %c0_44 = arith.constant 0 : index
    %142 = vector.load %arg31[%c8, %c0_44] : memref<16x32xf32, #tpu.memory_space<vmem>>, vector<8x32xf32>
    tpu.vector_store %arg31[%c8, %c0_44], %141 {strides = array<i32>} : memref<16x32xf32, #tpu.memory_space<vmem>>, vector<8x32xf32>,
    %c0_45 = arith.constant 0 : index
    %c0_46 = arith.constant 0 : index
    %143 = vector.load %arg31[%c0_45, %c0_46] : memref<16x32xf32, #tpu.memory_space<vmem>>, vector<16x32xf32>
    %c0_47 = arith.constant 0 : index
    %c0_48 = arith.constant 0 : index
    %144 = vector.load %arg7[%c0_47, %c0_48] : memref<1x32xf32, #tpu.memory_space<vmem>>, vector<1x32xf32>
    %145 = vector.broadcast %144 : vector<1x32xf32> to vector<16x32xf32>
    %146 = arith.addf %143, %145 : vector<16x32xf32>
    %147 = arith.addf %146, %24 : vector<16x32xf32>
    %c0_49 = arith.constant 0 : index
    %c0_50 = arith.constant 0 : index
    %148 = vector.load %arg8[%c0_49, %c0_50] : memref<1x32xf32, #tpu.memory_space<vmem>>, vector<1x32xf32>
    %c0_51 = arith.constant 0 : index
    %c0_52 = arith.constant 0 : index
    %149 = vector.load %arg9[%c0_51, %c0_52] : memref<1x32xf32, #tpu.memory_space<vmem>>, vector<1x32xf32>
    %cst_53 = arith.constant dense<0.000000e+00> : vector<16xf32>
    %150 = vector.multi_reduction <add>, %147, %cst_53 [1] : vector<16x32xf32> to vector<16xf32>
    %151 = vector.shape_cast %150 : vector<16xf32> to vector<16x1xf32>
    %cst_54 = arith.constant 3.200000e+01 : f32
    %152 = vector.broadcast %cst_54 : f32 to vector<16x1xf32>
    %153 = arith.divf %151, %152 : vector<16x1xf32>
    %154 = vector.broadcast %153 : vector<16x1xf32> to vector<16x32xf32>
    %155 = arith.subf %147, %154 : vector<16x32xf32>
    %156 = arith.mulf %155, %155 : vector<16x32xf32>
    %cst_55 = arith.constant dense<0.000000e+00> : vector<16xf32>
    %157 = vector.multi_reduction <add>, %156, %cst_55 [1] : vector<16x32xf32> to vector<16xf32>
    %158 = vector.shape_cast %157 : vector<16xf32> to vector<16x1xf32>
    %cst_56 = arith.constant 3.200000e+01 : f32
    %159 = vector.broadcast %cst_56 : f32 to vector<16x1xf32>
    %160 = arith.divf %158, %159 : vector<16x1xf32>
    %161 = vector.broadcast %153 : vector<16x1xf32> to vector<16x32xf32>
    %162 = arith.subf %147, %161 : vector<16x32xf32>
    %cst_57 = arith.constant 9.99999996E-13 : f32
    %163 = vector.broadcast %cst_57 : f32 to vector<16x1xf32>
    %164 = arith.addf %160, %163 : vector<16x1xf32>
    %165 = math.rsqrt %164 : vector<16x1xf32>
    %166 = vector.broadcast %165 : vector<16x1xf32> to vector<16x32xf32>
    %167 = arith.mulf %162, %166 : vector<16x32xf32>
    %168 = vector.broadcast %148 : vector<1x32xf32> to vector<16x32xf32>
    %169 = arith.mulf %167, %168 : vector<16x32xf32>
    %170 = vector.broadcast %149 : vector<1x32xf32> to vector<16x32xf32>
    %171 = arith.addf %169, %170 : vector<16x32xf32>
    %172 = arith.truncf %171 : vector<16x32xf32> to vector<16x32xbf16>
    %c0_58 = arith.constant 0 : index
    %c0_59 = arith.constant 0 : index
    %173 = vector.load %arg10[%c0_58, %c0_59] : memref<32x64xbf16, #tpu.memory_space<vmem>>, vector<32x64xbf16>
    %cst_60 = arith.constant dense<0.000000e+00> : vector<16x64xf32>
    %174 = tpu.matmul %172, %173, %cst_60 {dimension_numbers = #tpu.dot_dimension_numbers<[1], [0], [0], [1], [0, 0, 1, 1], [], []>} : vector<16x32xbf16>, vector<32x64xbf16>, vector<16x64xf32> -> vector<16x64xf32>
    %c0_61 = arith.constant 0 : index
    %c0_62 = arith.constant 0 : index
    %175 = vector.load %arg11[%c0_61, %c0_62] : memref<1x64xf32, #tpu.memory_space<vmem>>, vector<1x64xf32>
    %176 = vector.broadcast %175 : vector<1x64xf32> to vector<16x64xf32>
    %177 = arith.addf %174, %176 : vector<16x64xf32>
    %cst_63 = arith.constant 5.000000e-01 : f32
    %178 = vector.broadcast %cst_63 : f32 to vector<16x64xf32>
    %179 = arith.mulf %178, %177 : vector<16x64xf32>
    %cst_64 = arith.constant 4.471500e-02 : f32
    %180 = vector.broadcast %cst_64 : f32 to vector<16x64xf32>
    %181 = arith.mulf %180, %177 : vector<16x64xf32>
    %182 = arith.mulf %181, %177 : vector<16x64xf32>
    %183 = arith.mulf %182, %177 : vector<16x64xf32>
    %184 = arith.addf %177, %183 : vector<16x64xf32>
    %cst_65 = arith.constant 0.797884583 : f32
    %185 = vector.broadcast %cst_65 : f32 to vector<16x64xf32>
    %186 = arith.mulf %185, %184 : vector<16x64xf32>
    %187 = math.tanh %186 : vector<16x64xf32>
    %cst_66 = arith.constant 1.000000e+00 : f32
    %188 = vector.broadcast %cst_66 : f32 to vector<16x64xf32>
    %189 = arith.addf %188, %187 : vector<16x64xf32>
    %190 = arith.mulf %179, %189 : vector<16x64xf32>
    %191 = arith.truncf %190 : vector<16x64xf32> to vector<16x64xbf16>
    %c0_67 = arith.constant 0 : index
    %c0_68 = arith.constant 0 : index
    %192 = vector.load %arg12[%c0_67, %c0_68] : memref<64x32xbf16, #tpu.memory_space<vmem>>, vector<64x32xbf16>
    %cst_69 = arith.constant dense<0.000000e+00> : vector<16x32xf32>
    %193 = tpu.matmul %191, %192, %cst_69 {dimension_numbers = #tpu.dot_dimension_numbers<[1], [0], [0], [1], [0, 0, 1, 1], [], []>} : vector<16x64xbf16>, vector<64x32xbf16>, vector<16x32xf32> -> vector<16x32xf32>
    %c0_70 = arith.constant 0 : index
    %c0_71 = arith.constant 0 : index
    %194 = vector.load %arg13[%c0_70, %c0_71] : memref<1x32xf32, #tpu.memory_space<vmem>>, vector<1x32xf32>
    %195 = vector.broadcast %194 : vector<1x32xf32> to vector<16x32xf32>
    %196 = arith.addf %193, %195 : vector<16x32xf32>
    %197 = arith.addf %196, %171 : vector<16x32xf32>
    %c0_72 = arith.constant 0 : index
    %c0_73 = arith.constant 0 : index
    %198 = vector.load %arg14[%c0_72, %c0_73] : memref<1x32xf32, #tpu.memory_space<vmem>>, vector<1x32xf32>
    %c0_74 = arith.constant 0 : index
    %c0_75 = arith.constant 0 : index
    %199 = vector.load %arg15[%c0_74, %c0_75] : memref<1x32xf32, #tpu.memory_space<vmem>>, vector<1x32xf32>
    %cst_76 = arith.constant dense<0.000000e+00> : vector<16xf32>
    %200 = vector.multi_reduction <add>, %197, %cst_76 [1] : vector<16x32xf32> to vector<16xf32>
    %201 = vector.shape_cast %200 : vector<16xf32> to vector<16x1xf32>
    %cst_77 = arith.constant 3.200000e+01 : f32
    %202 = vector.broadcast %cst_77 : f32 to vector<16x1xf32>
    %203 = arith.divf %201, %202 : vector<16x1xf32>
    %204 = vector.broadcast %203 : vector<16x1xf32> to vector<16x32xf32>
    %205 = arith.subf %197, %204 : vector<16x32xf32>
    %206 = arith.mulf %205, %205 : vector<16x32xf32>
    %cst_78 = arith.constant dense<0.000000e+00> : vector<16xf32>
    %207 = vector.multi_reduction <add>, %206, %cst_78 [1] : vector<16x32xf32> to vector<16xf32>
    %208 = vector.shape_cast %207 : vector<16xf32> to vector<16x1xf32>
    %cst_79 = arith.constant 3.200000e+01 : f32
    %209 = vector.broadcast %cst_79 : f32 to vector<16x1xf32>
    %210 = arith.divf %208, %209 : vector<16x1xf32>
    %211 = vector.broadcast %203 : vector<16x1xf32> to vector<16x32xf32>
    %212 = arith.subf %197, %211 : vector<16x32xf32>
    %cst_80 = arith.constant 9.99999996E-13 : f32
    %213 = vector.broadcast %cst_80 : f32 to vector<16x1xf32>
    %214 = arith.addf %210, %213 : vector<16x1xf32>
    %215 = math.rsqrt %214 : vector<16x1xf32>
    %216 = vector.broadcast %215 : vector<16x1xf32> to vector<16x32xf32>
    %217 = arith.mulf %212, %216 : vector<16x32xf32>
    %218 = vector.broadcast %198 : vector<1x32xf32> to vector<16x32xf32>
    %219 = arith.mulf %217, %218 : vector<16x32xf32>
    %220 = vector.broadcast %199 : vector<1x32xf32> to vector<16x32xf32>
    %221 = arith.addf %219, %220 : vector<16x32xf32>
    %222 = arith.truncf %221 : vector<16x32xf32> to vector<16x32xbf16>
    %c0_81 = arith.constant 0 : index
    %c0_82 = arith.constant 0 : index
    %223 = vector.load %arg16[%c0_81, %c0_82] : memref<32x96xbf16, #tpu.memory_space<vmem>>, vector<32x96xbf16>
    %cst_83 = arith.constant dense<0.000000e+00> : vector<16x96xf32>
    %224 = tpu.matmul %222, %223, %cst_83 {dimension_numbers = #tpu.dot_dimension_numbers<[1], [0], [0], [1], [0, 0, 1, 1], [], []>} : vector<16x32xbf16>, vector<32x96xbf16>, vector<16x96xf32> -> vector<16x96xf32>
    %c0_84 = arith.constant 0 : index
    %c0_85 = arith.constant 0 : index
    %225 = vector.load %arg17[%c0_84, %c0_85] : memref<1x96xf32, #tpu.memory_space<vmem>>, vector<1x96xf32>
    %226 = vector.broadcast %225 : vector<1x96xf32> to vector<16x96xf32>
    %227 = arith.addf %224, %226 : vector<16x96xf32>
    %c0_86 = arith.constant 0 : index
    %c0_87 = arith.constant 0 : index
    %228 = vector.load %arg18[%c0_86, %c0_87] : memref<32x32xbf16, #tpu.memory_space<vmem>>, vector<32x32xbf16>
    %229 = vector.extract_strided_slice %25 {offsets = [0, 0], sizes = [1, 8], strides = [1, 1]} : vector<2x8xf32> to vector<1x8xf32>
    %230 = vector.extract_strided_slice %227 {offsets = [0, 0], sizes = [8, 16], strides = [1, 1]} : vector<16x96xf32> to vector<8x16xf32>
    %231 = vector.extract_strided_slice %227 {offsets = [0, 32], sizes = [8, 16], strides = [1, 1]} : vector<16x96xf32> to vector<8x16xf32>
    %232 = vector.extract_strided_slice %227 {offsets = [0, 64], sizes = [8, 16], strides = [1, 1]} : vector<16x96xf32> to vector<8x16xf32>
    %233 = arith.truncf %230 : vector<8x16xf32> to vector<8x16xbf16>
    %234 = arith.truncf %231 : vector<8x16xf32> to vector<8x16xbf16>
    %cst_88 = arith.constant dense<0.000000e+00> : vector<8x8xf32>
    %235 = tpu.matmul %233, %234, %cst_88 {dimension_numbers = #tpu.dot_dimension_numbers<[1], [1], [0], [0], [0, 0, 1, 0], [], []>} : vector<8x16xbf16>, vector<8x16xbf16>, vector<8x8xf32> -> vector<8x8xf32>
    %cst_89 = arith.constant 2.500000e-01 : f32
    %236 = vector.broadcast %cst_89 : f32 to vector<8x8xf32>
    %237 = arith.mulf %235, %236 : vector<8x8xf32>
    %238 = vector.broadcast %229 : vector<1x8xf32> to vector<8x8xf32>
    %239 = arith.addf %237, %238 : vector<8x8xf32>
    %cst_90 = arith.constant dense<0xFF800000> : vector<8xf32>
    %240 = vector.multi_reduction <maximumf>, %239, %cst_90 [1] : vector<8x8xf32> to vector<8xf32>
    %241 = vector.shape_cast %240 : vector<8xf32> to vector<8x1xf32>
    %242 = vector.broadcast %241 : vector<8x1xf32> to vector<8x8xf32>
    %243 = arith.subf %239, %242 : vector<8x8xf32>
    %244 = math.exp %243 : vector<8x8xf32>
    %cst_91 = arith.constant dense<0.000000e+00> : vector<8xf32>
    %245 = vector.multi_reduction <add>, %244, %cst_91 [1] : vector<8x8xf32> to vector<8xf32>
    %246 = vector.shape_cast %245 : vector<8xf32> to vector<8x1xf32>
    %247 = tpu.reciprocal %246 {approx = true} : vector<8x1xf32> -> vector<8x1xf32>
    %248 = vector.broadcast %247 : vector<8x1xf32> to vector<8x8xf32>
    %249 = arith.mulf %244, %248 : vector<8x8xf32>
    %250 = arith.truncf %249 : vector<8x8xf32> to vector<8x8xbf16>
    %251 = arith.truncf %232 : vector<8x16xf32> to vector<8x16xbf16>
    %cst_92 = arith.constant dense<0.000000e+00> : vector<8x16xf32>
    %252 = tpu.matmul %250, %251, %cst_92 {dimension_numbers = #tpu.dot_dimension_numbers<[1], [0], [0], [1], [0, 0, 1, 1], [], []>} : vector<8x8xbf16>, vector<8x16xbf16>, vector<8x16xf32> -> vector<8x16xf32>
    %253 = arith.truncf %252 : vector<8x16xf32> to vector<8x16xbf16>
    %254 = vector.extract_strided_slice %228 {offsets = [0, 0], sizes = [16, 32], strides = [1, 1]} : vector<32x32xbf16> to vector<16x32xbf16>
    %cst_93 = arith.constant dense<0.000000e+00> : vector<8x32xf32>
    %255 = tpu.matmul %253, %254, %cst_93 {dimension_numbers = #tpu.dot_dimension_numbers<[1], [0], [0], [1], [0, 0, 1, 1], [], []>} : vector<8x16xbf16>, vector<16x32xbf16>, vector<8x32xf32> -> vector<8x32xf32>
    %256 = vector.extract_strided_slice %227 {offsets = [0, 16], sizes = [8, 16], strides = [1, 1]} : vector<16x96xf32> to vector<8x16xf32>
    %257 = vector.extract_strided_slice %227 {offsets = [0, 48], sizes = [8, 16], strides = [1, 1]} : vector<16x96xf32> to vector<8x16xf32>
    %258 = vector.extract_strided_slice %227 {offsets = [0, 80], sizes = [8, 16], strides = [1, 1]} : vector<16x96xf32> to vector<8x16xf32>
    %259 = arith.truncf %256 : vector<8x16xf32> to vector<8x16xbf16>
    %260 = arith.truncf %257 : vector<8x16xf32> to vector<8x16xbf16>
    %cst_94 = arith.constant dense<0.000000e+00> : vector<8x8xf32>
    %261 = tpu.matmul %259, %260, %cst_94 {dimension_numbers = #tpu.dot_dimension_numbers<[1], [1], [0], [0], [0, 0, 1, 0], [], []>} : vector<8x16xbf16>, vector<8x16xbf16>, vector<8x8xf32> -> vector<8x8xf32>
    %cst_95 = arith.constant 2.500000e-01 : f32
    %262 = vector.broadcast %cst_95 : f32 to vector<8x8xf32>
    %263 = arith.mulf %261, %262 : vector<8x8xf32>
    %264 = vector.broadcast %229 : vector<1x8xf32> to vector<8x8xf32>
    %265 = arith.addf %263, %264 : vector<8x8xf32>
    %cst_96 = arith.constant dense<0xFF800000> : vector<8xf32>
    %266 = vector.multi_reduction <maximumf>, %265, %cst_96 [1] : vector<8x8xf32> to vector<8xf32>
    %267 = vector.shape_cast %266 : vector<8xf32> to vector<8x1xf32>
    %268 = vector.broadcast %267 : vector<8x1xf32> to vector<8x8xf32>
    %269 = arith.subf %265, %268 : vector<8x8xf32>
    %270 = math.exp %269 : vector<8x8xf32>
    %cst_97 = arith.constant dense<0.000000e+00> : vector<8xf32>
    %271 = vector.multi_reduction <add>, %270, %cst_97 [1] : vector<8x8xf32> to vector<8xf32>
    %272 = vector.shape_cast %271 : vector<8xf32> to vector<8x1xf32>
    %273 = tpu.reciprocal %272 {approx = true} : vector<8x1xf32> -> vector<8x1xf32>
    %274 = vector.broadcast %273 : vector<8x1xf32> to vector<8x8xf32>
    %275 = arith.mulf %270, %274 : vector<8x8xf32>
    %276 = arith.truncf %275 : vector<8x8xf32> to vector<8x8xbf16>
    %277 = arith.truncf %258 : vector<8x16xf32> to vector<8x16xbf16>
    %cst_98 = arith.constant dense<0.000000e+00> : vector<8x16xf32>
    %278 = tpu.matmul %276, %277, %cst_98 {dimension_numbers = #tpu.dot_dimension_numbers<[1], [0], [0], [1], [0, 0, 1, 1], [], []>} : vector<8x8xbf16>, vector<8x16xbf16>, vector<8x16xf32> -> vector<8x16xf32>
    %279 = arith.truncf %278 : vector<8x16xf32> to vector<8x16xbf16>
    %280 = vector.extract_strided_slice %228 {offsets = [16, 0], sizes = [16, 32], strides = [1, 1]} : vector<32x32xbf16> to vector<16x32xbf16>
    %cst_99 = arith.constant dense<0.000000e+00> : vector<8x32xf32>
    %281 = tpu.matmul %279, %280, %cst_99 {dimension_numbers = #tpu.dot_dimension_numbers<[1], [0], [0], [1], [0, 0, 1, 1], [], []>} : vector<8x16xbf16>, vector<16x32xbf16>, vector<8x32xf32> -> vector<8x32xf32>
    %282 = arith.addf %255, %281 : vector<8x32xf32>
    %c0_100 = arith.constant 0 : index
    %c0_101 = arith.constant 0 : index
    %283 = vector.load %arg31[%c0_100, %c0_101] : memref<16x32xf32, #tpu.memory_space<vmem>>, vector<8x32xf32>
    tpu.vector_store %arg31[%c0_100, %c0_101], %282 {strides = array<i32>} : memref<16x32xf32, #tpu.memory_space<vmem>>, vector<8x32xf32>,
    %284 = vector.extract_strided_slice %25 {offsets = [1, 0], sizes = [1, 8], strides = [1, 1]} : vector<2x8xf32> to vector<1x8xf32>
    %285 = vector.extract_strided_slice %227 {offsets = [8, 0], sizes = [8, 16], strides = [1, 1]} : vector<16x96xf32> to vector<8x16xf32>
    %286 = vector.extract_strided_slice %227 {offsets = [8, 32], sizes = [8, 16], strides = [1, 1]} : vector<16x96xf32> to vector<8x16xf32>
    %287 = vector.extract_strided_slice %227 {offsets = [8, 64], sizes = [8, 16], strides = [1, 1]} : vector<16x96xf32> to vector<8x16xf32>
    %288 = arith.truncf %285 : vector<8x16xf32> to vector<8x16xbf16>
    %289 = arith.truncf %286 : vector<8x16xf32> to vector<8x16xbf16>
    %cst_102 = arith.constant dense<0.000000e+00> : vector<8x8xf32>
    %290 = tpu.matmul %288, %289, %cst_102 {dimension_numbers = #tpu.dot_dimension_numbers<[1], [1], [0], [0], [0, 0, 1, 0], [], []>} : vector<8x16xbf16>, vector<8x16xbf16>, vector<8x8xf32> -> vector<8x8xf32>
    %cst_103 = arith.constant 2.500000e-01 : f32
    %291 = vector.broadcast %cst_103 : f32 to vector<8x8xf32>
    %292 = arith.mulf %290, %291 : vector<8x8xf32>
    %293 = vector.broadcast %284 : vector<1x8xf32> to vector<8x8xf32>
    %294 = arith.addf %292, %293 : vector<8x8xf32>
    %cst_104 = arith.constant dense<0xFF800000> : vector<8xf32>
    %295 = vector.multi_reduction <maximumf>, %294, %cst_104 [1] : vector<8x8xf32> to vector<8xf32>
    %296 = vector.shape_cast %295 : vector<8xf32> to vector<8x1xf32>
    %297 = vector.broadcast %296 : vector<8x1xf32> to vector<8x8xf32>
    %298 = arith.subf %294, %297 : vector<8x8xf32>
    %299 = math.exp %298 : vector<8x8xf32>
    %cst_105 = arith.constant dense<0.000000e+00> : vector<8xf32>
    %300 = vector.multi_reduction <add>, %299, %cst_105 [1] : vector<8x8xf32> to vector<8xf32>
    %301 = vector.shape_cast %300 : vector<8xf32> to vector<8x1xf32>
    %302 = tpu.reciprocal %301 {approx = true} : vector<8x1xf32> -> vector<8x1xf32>
    %303 = vector.broadcast %302 : vector<8x1xf32> to vector<8x8xf32>
    %304 = arith.mulf %299, %303 : vector<8x8xf32>
    %305 = arith.truncf %304 : vector<8x8xf32> to vector<8x8xbf16>
    %306 = arith.truncf %287 : vector<8x16xf32> to vector<8x16xbf16>
    %cst_106 = arith.constant dense<0.000000e+00> : vector<8x16xf32>
    %307 = tpu.matmul %305, %306, %cst_106 {dimension_numbers = #tpu.dot_dimension_numbers<[1], [0], [0], [1], [0, 0, 1, 1], [], []>} : vector<8x8xbf16>, vector<8x16xbf16>, vector<8x16xf32> -> vector<8x16xf32>
    %308 = arith.truncf %307 : vector<8x16xf32> to vector<8x16xbf16>
    %309 = vector.extract_strided_slice %228 {offsets = [0, 0], sizes = [16, 32], strides = [1, 1]} : vector<32x32xbf16> to vector<16x32xbf16>
    %cst_107 = arith.constant dense<0.000000e+00> : vector<8x32xf32>
    %310 = tpu.matmul %308, %309, %cst_107 {dimension_numbers = #tpu.dot_dimension_numbers<[1], [0], [0], [1], [0, 0, 1, 1], [], []>} : vector<8x16xbf16>, vector<16x32xbf16>, vector<8x32xf32> -> vector<8x32xf32>
    %311 = vector.extract_strided_slice %227 {offsets = [8, 16], sizes = [8, 16], strides = [1, 1]} : vector<16x96xf32> to vector<8x16xf32>
    %312 = vector.extract_strided_slice %227 {offsets = [8, 48], sizes = [8, 16], strides = [1, 1]} : vector<16x96xf32> to vector<8x16xf32>
    %313 = vector.extract_strided_slice %227 {offsets = [8, 80], sizes = [8, 16], strides = [1, 1]} : vector<16x96xf32> to vector<8x16xf32>
    %314 = arith.truncf %311 : vector<8x16xf32> to vector<8x16xbf16>
    %315 = arith.truncf %312 : vector<8x16xf32> to vector<8x16xbf16>
    %cst_108 = arith.constant dense<0.000000e+00> : vector<8x8xf32>
    %316 = tpu.matmul %314, %315, %cst_108 {dimension_numbers = #tpu.dot_dimension_numbers<[1], [1], [0], [0], [0, 0, 1, 0], [], []>} : vector<8x16xbf16>, vector<8x16xbf16>, vector<8x8xf32> -> vector<8x8xf32>
    %cst_109 = arith.constant 2.500000e-01 : f32
    %317 = vector.broadcast %cst_109 : f32 to vector<8x8xf32>
    %318 = arith.mulf %316, %317 : vector<8x8xf32>
    %319 = vector.broadcast %284 : vector<1x8xf32> to vector<8x8xf32>
    %320 = arith.addf %318, %319 : vector<8x8xf32>
    %cst_110 = arith.constant dense<0xFF800000> : vector<8xf32>
    %321 = vector.multi_reduction <maximumf>, %320, %cst_110 [1] : vector<8x8xf32> to vector<8xf32>
    %322 = vector.shape_cast %321 : vector<8xf32> to vector<8x1xf32>
    %323 = vector.broadcast %322 : vector<8x1xf32> to vector<8x8xf32>
    %324 = arith.subf %320, %323 : vector<8x8xf32>
    %325 = math.exp %324 : vector<8x8xf32>
    %cst_111 = arith.constant dense<0.000000e+00> : vector<8xf32>
    %326 = vector.multi_reduction <add>, %325, %cst_111 [1] : vector<8x8xf32> to vector<8xf32>
    %327 = vector.shape_cast %326 : vector<8xf32> to vector<8x1xf32>
    %328 = tpu.reciprocal %327 {approx = true} : vector<8x1xf32> -> vector<8x1xf32>
    %329 = vector.broadcast %328 : vector<8x1xf32> to vector<8x8xf32>
    %330 = arith.mulf %325, %329 : vector<8x8xf32>
    %331 = arith.truncf %330 : vector<8x8xf32> to vector<8x8xbf16>
    %332 = arith.truncf %313 : vector<8x16xf32> to vector<8x16xbf16>
    %cst_112 = arith.constant dense<0.000000e+00> : vector<8x16xf32>
    %333 = tpu.matmul %331, %332, %cst_112 {dimension_numbers = #tpu.dot_dimension_numbers<[1], [0], [0], [1], [0, 0, 1, 1], [], []>} : vector<8x8xbf16>, vector<8x16xbf16>, vector<8x16xf32> -> vector<8x16xf32>
    %334 = arith.truncf %333 : vector<8x16xf32> to vector<8x16xbf16>
    %335 = vector.extract_strided_slice %228 {offsets = [16, 0], sizes = [16, 32], strides = [1, 1]} : vector<32x32xbf16> to vector<16x32xbf16>
    %cst_113 = arith.constant dense<0.000000e+00> : vector<8x32xf32>
    %336 = tpu.matmul %334, %335, %cst_113 {dimension_numbers = #tpu.dot_dimension_numbers<[1], [0], [0], [1], [0, 0, 1, 1], [], []>} : vector<8x16xbf16>, vector<16x32xbf16>, vector<8x32xf32> -> vector<8x32xf32>
    %337 = arith.addf %310, %336 : vector<8x32xf32>
    %c8_114 = arith.constant 8 : index
    %c0_115 = arith.constant 0 : index
    %338 = vector.load %arg31[%c8_114, %c0_115] : memref<16x32xf32, #tpu.memory_space<vmem>>, vector<8x32xf32>
    tpu.vector_store %arg31[%c8_114, %c0_115], %337 {strides = array<i32>} : memref<16x32xf32, #tpu.memory_space<vmem>>, vector<8x32xf32>,
    %c0_116 = arith.constant 0 : index
    %c0_117 = arith.constant 0 : index
    %339 = vector.load %arg31[%c0_116, %c0_117] : memref<16x32xf32, #tpu.memory_space<vmem>>, vector<16x32xf32>
    %c0_118 = arith.constant 0 : index
    %c0_119 = arith.constant 0 : index
    %340 = vector.load %arg19[%c0_118, %c0_119] : memref<1x32xf32, #tpu.memory_space<vmem>>, vector<1x32xf32>
    %341 = vector.broadcast %340 : vector<1x32xf32> to vector<16x32xf32>
    %342 = arith.addf %339, %341 : vector<16x32xf32>
    %343 = arith.addf %342, %221 : vector<16x32xf32>
    %c0_120 = arith.constant 0 : index
    %c0_121 = arith.constant 0 : index
    %344 = vector.load %arg20[%c0_120, %c0_121] : memref<1x32xf32, #tpu.memory_space<vmem>>, vector<1x32xf32>
    %c0_122 = arith.constant 0 : index
    %c0_123 = arith.constant 0 : index
    %345 = vector.load %arg21[%c0_122, %c0_123] : memref<1x32xf32, #tpu.memory_space<vmem>>, vector<1x32xf32>
    %cst_124 = arith.constant dense<0.000000e+00> : vector<16xf32>
    %346 = vector.multi_reduction <add>, %343, %cst_124 [1] : vector<16x32xf32> to vector<16xf32>
    %347 = vector.shape_cast %346 : vector<16xf32> to vector<16x1xf32>
    %cst_125 = arith.constant 3.200000e+01 : f32
    %348 = vector.broadcast %cst_125 : f32 to vector<16x1xf32>
    %349 = arith.divf %347, %348 : vector<16x1xf32>
    %350 = vector.broadcast %349 : vector<16x1xf32> to vector<16x32xf32>
    %351 = arith.subf %343, %350 : vector<16x32xf32>
    %352 = arith.mulf %351, %351 : vector<16x32xf32>
    %cst_126 = arith.constant dense<0.000000e+00> : vector<16xf32>
    %353 = vector.multi_reduction <add>, %352, %cst_126 [1] : vector<16x32xf32> to vector<16xf32>
    %354 = vector.shape_cast %353 : vector<16xf32> to vector<16x1xf32>
    %cst_127 = arith.constant 3.200000e+01 : f32
    %355 = vector.broadcast %cst_127 : f32 to vector<16x1xf32>
    %356 = arith.divf %354, %355 : vector<16x1xf32>
    %357 = vector.broadcast %349 : vector<16x1xf32> to vector<16x32xf32>
    %358 = arith.subf %343, %357 : vector<16x32xf32>
    %cst_128 = arith.constant 9.99999996E-13 : f32
    %359 = vector.broadcast %cst_128 : f32 to vector<16x1xf32>
    %360 = arith.addf %356, %359 : vector<16x1xf32>
    %361 = math.rsqrt %360 : vector<16x1xf32>
    %362 = vector.broadcast %361 : vector<16x1xf32> to vector<16x32xf32>
    %363 = arith.mulf %358, %362 : vector<16x32xf32>
    %364 = vector.broadcast %344 : vector<1x32xf32> to vector<16x32xf32>
    %365 = arith.mulf %363, %364 : vector<16x32xf32>
    %366 = vector.broadcast %345 : vector<1x32xf32> to vector<16x32xf32>
    %367 = arith.addf %365, %366 : vector<16x32xf32>
    %368 = arith.truncf %367 : vector<16x32xf32> to vector<16x32xbf16>
    %c0_129 = arith.constant 0 : index
    %c0_130 = arith.constant 0 : index
    %369 = vector.load %arg22[%c0_129, %c0_130] : memref<32x64xbf16, #tpu.memory_space<vmem>>, vector<32x64xbf16>
    %cst_131 = arith.constant dense<0.000000e+00> : vector<16x64xf32>
    %370 = tpu.matmul %368, %369, %cst_131 {dimension_numbers = #tpu.dot_dimension_numbers<[1], [0], [0], [1], [0, 0, 1, 1], [], []>} : vector<16x32xbf16>, vector<32x64xbf16>, vector<16x64xf32> -> vector<16x64xf32>
    %c0_132 = arith.constant 0 : index
    %c0_133 = arith.constant 0 : index
    %371 = vector.load %arg23[%c0_132, %c0_133] : memref<1x64xf32, #tpu.memory_space<vmem>>, vector<1x64xf32>
    %372 = vector.broadcast %371 : vector<1x64xf32> to vector<16x64xf32>
    %373 = arith.addf %370, %372 : vector<16x64xf32>
    %cst_134 = arith.constant 5.000000e-01 : f32
    %374 = vector.broadcast %cst_134 : f32 to vector<16x64xf32>
    %375 = arith.mulf %374, %373 : vector<16x64xf32>
    %cst_135 = arith.constant 4.471500e-02 : f32
    %376 = vector.broadcast %cst_135 : f32 to vector<16x64xf32>
    %377 = arith.mulf %376, %373 : vector<16x64xf32>
    %378 = arith.mulf %377, %373 : vector<16x64xf32>
    %379 = arith.mulf %378, %373 : vector<16x64xf32>
    %380 = arith.addf %373, %379 : vector<16x64xf32>
    %cst_136 = arith.constant 0.797884583 : f32
    %381 = vector.broadcast %cst_136 : f32 to vector<16x64xf32>
    %382 = arith.mulf %381, %380 : vector<16x64xf32>
    %383 = math.tanh %382 : vector<16x64xf32>
    %cst_137 = arith.constant 1.000000e+00 : f32
    %384 = vector.broadcast %cst_137 : f32 to vector<16x64xf32>
    %385 = arith.addf %384, %383 : vector<16x64xf32>
    %386 = arith.mulf %375, %385 : vector<16x64xf32>
    %387 = arith.truncf %386 : vector<16x64xf32> to vector<16x64xbf16>
    %c0_138 = arith.constant 0 : index
    %c0_139 = arith.constant 0 : index
    %388 = vector.load %arg24[%c0_138, %c0_139] : memref<64x32xbf16, #tpu.memory_space<vmem>>, vector<64x32xbf16>
    %cst_140 = arith.constant dense<0.000000e+00> : vector<16x32xf32>
    %389 = tpu.matmul %387, %388, %cst_140 {dimension_numbers = #tpu.dot_dimension_numbers<[1], [0], [0], [1], [0, 0, 1, 1], [], []>} : vector<16x64xbf16>, vector<64x32xbf16>, vector<16x32xf32> -> vector<16x32xf32>
    %c0_141 = arith.constant 0 : index
    %c0_142 = arith.constant 0 : index
    %390 = vector.load %arg25[%c0_141, %c0_142] : memref<1x32xf32, #tpu.memory_space<vmem>>, vector<1x32xf32>
    %391 = vector.broadcast %390 : vector<1x32xf32> to vector<16x32xf32>
    %392 = arith.addf %389, %391 : vector<16x32xf32>
    %393 = arith.addf %392, %367 : vector<16x32xf32>
    %c0_143 = arith.constant 0 : index
    %c0_144 = arith.constant 0 : index
    %394 = vector.load %arg26[%c0_143, %c0_144] : memref<1x32xf32, #tpu.memory_space<vmem>>, vector<1x32xf32>
    %c0_145 = arith.constant 0 : index
    %c0_146 = arith.constant 0 : index
    %395 = vector.load %arg27[%c0_145, %c0_146] : memref<1x32xf32, #tpu.memory_space<vmem>>, vector<1x32xf32>
    %cst_147 = arith.constant dense<0.000000e+00> : vector<16xf32>
    %396 = vector.multi_reduction <add>, %393, %cst_147 [1] : vector<16x32xf32> to vector<16xf32>
    %397 = vector.shape_cast %396 : vector<16xf32> to vector<16x1xf32>
    %cst_148 = arith.constant 3.200000e+01 : f32
    %398 = vector.broadcast %cst_148 : f32 to vector<16x1xf32>
    %399 = arith.divf %397, %398 : vector<16x1xf32>
    %400 = vector.broadcast %399 : vector<16x1xf32> to vector<16x32xf32>
    %401 = arith.subf %393, %400 : vector<16x32xf32>
    %402 = arith.mulf %401, %401 : vector<16x32xf32>
    %cst_149 = arith.constant dense<0.000000e+00> : vector<16xf32>
    %403 = vector.multi_reduction <add>, %402, %cst_149 [1] : vector<16x32xf32> to vector<16xf32>
    %404 = vector.shape_cast %403 : vector<16xf32> to vector<16x1xf32>
    %cst_150 = arith.constant 3.200000e+01 : f32
    %405 = vector.broadcast %cst_150 : f32 to vector<16x1xf32>
    %406 = arith.divf %404, %405 : vector<16x1xf32>
    %407 = vector.broadcast %399 : vector<16x1xf32> to vector<16x32xf32>
    %408 = arith.subf %393, %407 : vector<16x32xf32>
    %cst_151 = arith.constant 9.99999996E-13 : f32
    %409 = vector.broadcast %cst_151 : f32 to vector<16x1xf32>
    %410 = arith.addf %406, %409 : vector<16x1xf32>
    %411 = math.rsqrt %410 : vector<16x1xf32>
    %412 = vector.broadcast %411 : vector<16x1xf32> to vector<16x32xf32>
    %413 = arith.mulf %408, %412 : vector<16x32xf32>
    %414 = vector.broadcast %394 : vector<1x32xf32> to vector<16x32xf32>
    %415 = arith.mulf %413, %414 : vector<16x32xf32>
    %416 = vector.broadcast %395 : vector<1x32xf32> to vector<16x32xf32>
    %417 = arith.addf %415, %416 : vector<16x32xf32>
    %418 = arith.truncf %417 : vector<16x32xf32> to vector<16x32xbf16>
    %c0_152 = arith.constant 0 : index
    %c0_153 = arith.constant 0 : index
    %419 = vector.load %arg28[%c0_152, %c0_153] : memref<32x7xbf16, #tpu.memory_space<vmem>>, vector<32x7xbf16>
    %cst_154 = arith.constant dense<0.000000e+00> : vector<16x7xf32>
    %420 = tpu.matmul %418, %419, %cst_154 {dimension_numbers = #tpu.dot_dimension_numbers<[1], [0], [0], [1], [0, 0, 1, 1], [], []>} : vector<16x32xbf16>, vector<32x7xbf16>, vector<16x7xf32> -> vector<16x7xf32>
    %c0_155 = arith.constant 0 : index
    %c0_156 = arith.constant 0 : index
    %421 = vector.load %arg29[%c0_155, %c0_156] : memref<1x7xf32, #tpu.memory_space<vmem>>, vector<1x7xf32>
    %422 = vector.broadcast %421 : vector<1x7xf32> to vector<16x7xf32>
    %423 = arith.addf %420, %422 : vector<16x7xf32>
    %424 = vector.extract_strided_slice %423 {offsets = [0, 0], sizes = [1, 7], strides = [1, 1]} : vector<16x7xf32> to vector<1x7xf32>
    %c0_157 = arith.constant 0 : index
    %c0_158 = arith.constant 0 : index
    %425 = vector.load %arg30[%c0_157, %c0_158] : memref<2x7xf32, #tpu.memory_space<vmem>>, vector<1x7xf32>
    tpu.vector_store %arg30[%c0_157, %c0_158], %424 {strides = array<i32>} : memref<2x7xf32, #tpu.memory_space<vmem>>, vector<1x7xf32>,
    %426 = vector.extract_strided_slice %423 {offsets = [8, 0], sizes = [1, 7], strides = [1, 1]} : vector<16x7xf32> to vector<1x7xf32>
    %c1 = arith.constant 1 : index
    %c0_159 = arith.constant 0 : index
    %427 = vector.load %arg30[%c1, %c0_159] : memref<2x7xf32, #tpu.memory_space<vmem>>, vector<1x7xf32>
    tpu.vector_store %arg30[%c1, %c0_159], %426 {strides = array<i32>} : memref<2x7xf32, #tpu.memory_space<vmem>>, vector<1x7xf32>,
    return
  }
}

</mosaic_0001>

<bundles_post_ra>
// kernel: multitask_forward.1
= control target key start
LH: loop header
LB: loop body
LE: loop exit
PB: predicated region body
PF: predicated region fallthrough
CT: control target
= control target key end

     0   :  { %vm131_vm0 = vcmask 261120   ;;  %s2747_s6 = smov 4   ;;  %v2748_v15 = vmov 0.0   ;;  %vm2749_vm1 = vmmov 0   ;;  %s2750_s10 = smov 2   ;;  %vm252_vm2 = vcmask 130048   ;;  %s3161_s0 = inlined_call_operand.smem [shape: u32[31], index: -1, kind: input, shape index: {}] }
   0x1   :  { %s1_s5 = sld [smem:[%s3161_s0]]   ;;  %2404 = vmatprep.subr.bf16.mxu0 %v2748_v15  ;;  %2412 = vmatprep.subr.bf16.mxu1 %v2748_v15  ;;  %s2751_s14 = smov 3   ;;  %v300_v47 = vlaneseq  ;;  %vm305_vm3 = vcmask 64512   ;;  %vm323_vm4 = vcmask 1043456   ;;  %vm1080_vm5 = vcmask 523264  }
   0x2   :  { %s2232_s9 = sld [smem:[%s3161_s0 + %s2747_s6]]   ;;  %2408 = vmatprep.mubr.msk.bf16.mxu0 %vm2749_vm1, %v2748_v15  ;;  %2414 = vmatprep.mubr.msk.bf16.mxu1 %vm2749_vm1, %v2748_v15  ;;  %s2752_s18 = smov 5   ;;  %vm2222_vm6 = vcmask 49152  }
   0x3   :  { %s2230_s13 = sld [smem:[%s3161_s0 + %s2750_s10]]   ;;  %s2753_s22 = smov 80   ;;  %v2847_v48 = vshrl.u32 %v300_v47, 7 }
   0x4   :  { %s2231_s17 = sld [smem:[%s3161_s0 + %s2751_s14]]   ;;  %s2754_s23 = smov 96  }
   0x5   :  { %s2233_s21 = sld [smem:[%s3161_s0 + %s2752_s18]]   ;;  %s2755_s24 = smov 112   ;;  %v302_v49 = vsub.s32 0, %v2847_v48 }
   0x6   :  { %s2756_s25 = smov 1   ;;  %s2757_s29 = smov 64  }
   0x7   :  { %v127_v0 = vld [vmem:[%s1_s5] sm:$0xff]  ;;  %v128_v1 = vld [vmem:[%s1_s5 + $0x8] sm:$0xff]  ;;  %s2229_s28 = sld [smem:[%s3161_s0 + %s2756_s25]]   ;;  %s2758_s30 = smov 48  }
   0x8   :  { %v132_v2 = vsel %vm131_vm0, %v127_v0, 0.0  ;;  %v135_v3 = vsel %vm131_vm0, %v128_v1, 0.0  ;;  %v2665_v14 = vld [vmem:[%s2232_s9] sm:$0xff]   ;;  %v2666_v16 = vld [vmem:[%s2232_s9 + $0x8] sm:$0xff]   ;;  %s2759_s1 = smov 6   ;;  %s2760_s5 = smov 7  }
   0x9   :  { %133 = vadd.xlane.f32.xlu0 %v132_v2  ;;  %2405 = vmatpush3.bf16.msra.mxu0 %v2665_v14  ;;  %v2259_v25 = vld [vmem:[%s2230_s13] ss:$0 sm:$0xff]  ;;  %s2234_s4 = sld [smem:[%s3161_s0 + %s2759_s1]]   ;;  %s2761_s9 = smov 10  }
   0xa   :  { %2406 = vmatprep.subr.bf16.mxu0 %v2748_v15  ;;  %v2260_v29 = vld [vmem:[%s2231_s17] ss:$0 sm:$0xff]  ;;  %s2235_s8 = sld [smem:[%s3161_s0 + %s2760_s5]]   ;;  %s2762_s13 = smov 8  }
   0xb   :  { %v2261_v34 = vld [vmem:[%s2233_s21] ss:$0 sm:$0xff]  ;;  %s2238_s12 = sld [smem:[%s3161_s0 + %s2761_s9]]   ;;  %s2763_s17 = smov 9  }
   0xc   :  { %s2236_s16 = sld [smem:[%s3161_s0 + %s2762_s13]]   ;;  %s2764_s21 = smov 12  }
   0xd   :  { %136 = vadd.xlane.f32.xlu0 %v135_v3  ;;  %2407 = vmatpush3.bf16.msra.mxu0 %v2666_v16  ;;  %v2850_v50 = vld [vmem:[%s2229_s28] sm:$0x3]  ;;  %s2237_s20 = sld [smem:[%s3161_s0 + %s2763_s17]]   ;;  %s2765_s28 = smov 11  }
   0xe   :  { %2418 = vmatprep.subr.bf16.mxu0 %v2748_v15  ;;  %v2853_v51 = vrot.slane %v2850_v50, %v302_v49  ;;  %s2240_s27 = sld [smem:[%s3161_s0 + %s2764_s21]]   ;;  %s2774_s6 = smov 20  }
   0xf   :  { %s2239_s3 = sld [smem:[%s3161_s0 + %s2765_s28]]   ;;  %s2772_s28 = smov 19  }
  0x10   :  { %s2248_s9 = sld [smem:[%s3161_s0 + %s2774_s6]]   ;;  %s2775_s10 = smov 21  }
  0x11   :  { %s2249_s13 = sld [smem:[%s3161_s0 + %s2775_s10]]   ;;  %s2776_s14 = smov 24  }
  0x12   :  { %s2252_s17 = sld [smem:[%s3161_s0 + %s2776_s14]]   ;;  %s2777_s18 = smov 23  }
  0x13   :  { %s2251_s21 = sld [smem:[%s3161_s0 + %s2777_s18]]   ;;  %s2778_s25 = smov 25  }
  0x14   :  { %s2780_s2 = smov 26  }
  0x96   :  { %v134_v4 = vpop.xlane.xlu0 %133 }
  0x97   :  { %v139_v5 = vmul.f32 0.03125, %v134_v4 }
  0x99   :  { %v141_v6 = vsub.f32 %v127_v0, %v139_v5 }
  0x9a   :  { %v137_v7 = vpop.xlane.xlu0 %136 }
  0x9b   :  { %v140_v8 = vmul.f32 0.03125, %v137_v7  ;;  %v143_v9 = vmul.f32 %v141_v6, %v141_v6 }
  0x9d   :  { %v142_v10 = vsub.f32 %v128_v1, %v140_v8  ;;  %v145_v11 = vsel %vm131_vm0, %v143_v9, 0.0 }
  0x9e   :  { %146 = vadd.xlane.f32.xlu1 %v145_v11 }
  0x9f   :  { %v144_v12 = vmul.f32 %v142_v10, %v142_v10 }
  0xa1   :  { %v148_v13 = vsel %vm131_vm0, %v144_v12, 0.0 }
  0xa2   :  { %149 = vadd.xlane.f32.xlu1 %v148_v13 }
 0x12b   :  { %v147_v17 = vpop.xlane.xlu1 %146 }
 0x12c   :  { %v151_v18 = vmul.f32 0.03125, %v147_v17 }
 0x12e   :  { %v153_v19 = vadd.f32 1e-12, %v151_v18 }
 0x12f   :  { %v150_v20 = vpop.xlane.xlu1 %149 }
 0x130   :  { %2687 = vrsqrt.f32 %v153_v19  ;;  %v152_v21 = vmul.f32 0.03125, %v150_v20 }
 0x132   :  { %v154_v22 = vadd.f32 1e-12, %v152_v21 }
 0x134   :  { %2689 = vrsqrt.f32 %v154_v22 }
 0x13a   :  { %v2688_v23 = vpop.eup %2687 }
 0x13b   :  { %v157_v24 = vmul.f32 %v2688_v23, %v141_v6 }
 0x13d   :  { %v165_v28 = vmul.f32 %v2259_v25, %v157_v24 }
 0x13e   :  { %v2690_v26 = vpop.eup %2689 }
 0x13f   :  { %v158_v27 = vmul.f32 %v2690_v26, %v142_v10  ;;  %v2813_v31 = vadd.f32 %v2260_v29, %v165_v28  ;;  %v2667_v28 = vld [vmem:[%s2234_s4 + $0x8] sm:$0xff]  }
 0x141   :  { %v166_v30 = vmul.f32 %v2259_v25, %v158_v27 }
 0x143   :  { %v2815_v32 = vadd.f32 %v2260_v29, %v166_v30 }
 0x145   :  { %v176_v33 = vpack.c.bf16 %v2815_v32, %v2813_v31 }
 0x147   :  { %2409 = vmatmul.mubr.msk.bf16.vlgmr.msra.gmra.mrb[0].mxu0 %vm131_vm0, %v176_v33 }
 0x148   :  { %2420 = vmatprep.mubr.msk.bf16.mxu0 %vm2749_vm1, %v2748_v15 }
 0x21a   :  { %v237_v35 = vpop.f32.mrb[0].mxu0 }
 0x21b   :  { %v238_v36 = vadd.f32 %v2261_v34, %v237_v35  ;;  %v2410_v37 = vpop.f32.mrb[1].mxu0 }
 0x21c   :  { %v240_v38 = vpop.f32.mrb[2].mxu0 }
 0x21d   :  { %v2825_v39 = vpack.c.bf16 %v238_v36, %v238_v36  ;;  %v241_v40 = vadd.f32 %v2261_v34, %v240_v38  ;;  %v2411_v41 = vpop.f32.mrb[3].mxu0  ;;  %v2893_v36 = vld [vmem:[%s2234_s4] sm:$0xff]   ;;  %s2766_s4 = smov 13  }
 0x21e   :  { %v633_v41 = vsub.s32 1, %v2847_v48  ;;  %s2241_s7 = sld [smem:[%s3161_s0 + %s2766_s4]]   ;;  %s2781_s4 = smov 27  }
 0x21f   :  { %370 = vrot.lane.b32.xlu1 %v2825_v39, %s2753_s22  ;;  %250 = vrot.lane.b32.xlu0 %v2825_v39, %s2754_s23  ;;  %v2861_v2 = vpack.c.bf16 %v241_v40, %v241_v40 }
 0x223   :  { %368 = vrot.lane.b32.xlu1 %v2825_v39, %s2755_s24 }
 0x291   :  { %v251_v42 = vpop.permute.xlu0 %250  ;;  %v371_v44 = vpop.permute.xlu1 %370 }
 0x292   :  { %v257_v43 = vsel %vm252_vm2, %v251_v42, 0  ;;  %v376_v45 = vsel %vm252_vm2, %v371_v44, 0  ;;  %v2902_v42 = vrot.slane %v2850_v50, %v633_v41 }
 0x293   :  { %2413 = vmatpush3.bf16.xpose.msra.mxu1 %v257_v43 }
 0x294   :  { %2424 = vmatprep.subr.bf16.mxu1 %v2748_v15 }
 0x295   :  { %v369_v46 = vpop.permute.xlu1 %368 }
 0x29a   :  { %2415 = vmatmul.mubr.msk.bf16.vlgmr.msra.gmra.mrb[0].mxu1 %vm252_vm2, %v2825_v39 }
 0x29b   :  { %2425 = vmatpush3.bf16.xpose.msra.mxu1 %v376_v45  ;;  %2426 = vmatprep.mubr.msk.bf16.mxu1 %vm2749_vm1, %v2748_v15 }
 0x29c   :  { %2436 = vmatprep.subr.bf16.mxu1 %v2748_v15 }
 0x2a2   :  { %2427 = vmatmul.mubr.msk.bf16.vlgmr.msra.gmra.mrb[4].mxu1 %vm252_vm2, %v369_v46 }
 0x2a3   :  { %2438 = vmatprep.mubr.msk.bf16.mxu1 %vm2749_vm1, %v2748_v15  ;;  %2437 = vmatpush3.bf16.msra.mxu1 %v2667_v28 }
 0x2a4   :  { %2442 = vmatprep.subr.bf16.mxu1 %v2748_v15 }
 0x36d   :  { %v293_v52 = vpop.f32.mrb[0].mxu1 }
 0x36e   :  { %v299_v53 = vmul.f32 0.25, %v293_v52  ;;  %v2416_v54 = vpop.f32.mrb[1].mxu1 }
 0x36f   :  { %v296_v55 = vpop.f32.mrb[2].mxu1 }
 0x370   :  { %v2417_v56 = vpop.f32.mrb[3].mxu1  ;;  %v304_v57 = vadd.f32 %v2853_v51, %v299_v53 }
 0x372   :  { %v306_v58 = vsel %vm305_vm3, %v304_v57, -inf }
 0x373   :  { %307 = vmax.xlane.f32.xlu1 %v306_v58 }
 0x375   :  { %v412_v59 = vpop.f32.mrb[4].mxu1 }
 0x376   :  { %v418_v60 = vmul.f32 0.25, %v412_v59  ;;  %v2428_v61 = vpop.f32.mrb[5].mxu1 }
 0x377   :  { %v415_v62 = vpop.f32.mrb[6].mxu1 }
 0x378   :  { %v2429_v63 = vpop.f32.mrb[7].mxu1  ;;  %v419_v0 = vadd.f32 %v418_v60, %v2853_v51 }
 0x37a   :  { %v420_v1 = vsel %vm305_vm3, %v419_v0, -inf }
 0x37b   :  { %421 = vmax.xlane.f32.xlu0 %v420_v1 }
 0x384   :  { %318 = vrot.lane.b32.xlu1 %v2825_v39, %s2757_s29 }
 0x388   :  { %582 = vrot.lane.b32.xlu1 %v2861_v2, %s2754_s23 }
 0x38c   :  { %699 = vrot.lane.b32.xlu1 %v2861_v2, %s2753_s22 }
 0x390   :  { %697 = vrot.lane.b32.xlu1 %v2861_v2, %s2755_s24 }
 0x400   :  { %v308_v3 = vpop.xlane.xlu1 %307 }
 0x401   :  { %v309_v4 = vsub.f32 %v304_v57, %v308_v3 }
 0x403   :  { %v310_v5 = vmul.f32 1.442695, %v309_v4 }
 0x404   :  { %v319_v6 = vpop.permute.xlu1 %318 }
 0x405   :  { %2691 = vpow2.f32 %v310_v5  ;;  %v325_v7 = vsel %vm323_vm4, %v319_v6, 0 }
 0x406   :  { %2419 = vmatpush3.bf16.msra.mxu0 %v325_v7 }
 0x407   :  { %2430 = vmatprep.subr.bf16.mxu0 %v2748_v15 }
 0x408   :  { %v422_v8 = vpop.xlane.xlu0 %421  ;;  %v583_v25 = vpop.permute.xlu1 %582 }
 0x409   :  { %v423_v9 = vsub.f32 %v419_v0, %v422_v8  ;;  %v588_v27 = vsel %vm252_vm2, %v583_v25, 0 }
 0x40b   :  { %v424_v10 = vmul.f32 1.442695, %v423_v9  ;;  %v2279_v9 = vld [vmem:[%s2235_s8] ss:$0 sm:$0xff]  ;;  %s2767_s8 = smov 16  }
 0x40c   :  { %v700_v47 = vpop.permute.xlu1 %699  ;;  %s2244_s11 = sld [smem:[%s3161_s0 + %s2767_s8]]   ;;  %s2782_s8 = smov 29  }
 0x40d   :  { %2693 = vpow2.f32 %v424_v10  ;;  %v705_v55 = vsel %vm252_vm2, %v700_v47, 0 }
 0x40f   :  { %v2692_v11 = vpop.eup %2691 }
 0x410   :  { %v312_v12 = vsel %vm305_vm3, %v2692_v11, 0.0  ;;  %v698_v48 = vpop.permute.xlu1 %697 }
 0x411   :  { %313 = vadd.xlane.f32.xlu0 %v312_v12 }
 0x417   :  { %v2694_v13 = vpop.eup %2693 }
 0x418   :  { %v426_v14 = vsel %vm305_vm3, %v2694_v13, 0.0 }
 0x419   :  { %427 = vadd.xlane.f32.xlu0 %v426_v14 }
 0x42f   :  { %432 = vrot.lane.b32.xlu0 %v2825_v39, %s2758_s30 }
 0x49e   :  { %v314_v16 = vpop.xlane.xlu0 %313 }
 0x49f   :  { %2695 = vrcp.f32 %v314_v16 }
 0x4a6   :  { %v428_v17 = vpop.xlane.xlu0 %427 }
 0x4a7   :  { %2697 = vrcp.f32 %v428_v17 }
 0x4a9   :  { %v2696_v18 = vpop.eup %2695 }
 0x4aa   :  { %v316_v19 = vmul.f32 %v2696_v18, %v2692_v11  ;;  %v433_v20 = vpop.permute.xlu0 %432 }
 0x4ab   :  { %v438_v22 = vsel %vm323_vm4, %v433_v20, 0 }
 0x4ac   :  { %v317_v21 = vpack.c.bf16 %v316_v19, %v316_v19 }
 0x4ae   :  { %2421 = vmatmul.mubr.msk.bf16.vlgmr.msra.gmra.mrb[4].mxu0 %vm305_vm3, %v317_v21 }
 0x4af   :  { %2431 = vmatpush3.bf16.msra.mxu0 %v438_v22  ;;  %2432 = vmatprep.mubr.msk.bf16.mxu0 %vm2749_vm1, %v2748_v15 }
 0x4b0   :  { %2448 = vmatprep.subr.bf16.mxu0 %v2748_v15 }
 0x4b1   :  { %v2698_v23 = vpop.eup %2697 }
 0x4b2   :  { %v430_v24 = vmul.f32 %v2698_v23, %v2694_v13 }
 0x4b4   :  { %v431_v26 = vpack.c.bf16 %v430_v24, %v430_v24 }
 0x4b6   :  { %2433 = vmatmul.mubr.msk.bf16.vlgmr.msra.gmra.mrb[8].mxu0 %vm305_vm3, %v431_v26 }
 0x4b7   :  { %2450 = vmatprep.mubr.msk.bf16.mxu0 %vm2749_vm1, %v2748_v15 }
 0x4b8   :  { %2449 = vmatpush3.bf16.xpose.msra.mxu0 %v588_v27 }
 0x4b9   :  { %2454 = vmatprep.subr.bf16.mxu0 %v2748_v15 }
 0x4bf   :  { %2451 = vmatmul.mubr.msk.bf16.vlgmr.msra.gmra.mrb[12].mxu0 %vm252_vm2, %v2861_v2 }
 0x4c0   :  { %2456 = vmatprep.mubr.msk.bf16.mxu0 %vm2749_vm1, %v2748_v15 }
 0x581   :  { %v361_v29 = vpop.f32.mrb[4].mxu0 }
 0x582   :  { %v2422_v30 = vpop.f32.mrb[5].mxu0  ;;  %v367_v53 = vpack.c.bf16 %v361_v29, %v361_v29 }
 0x583   :  { %v364_v33 = vpop.f32.mrb[6].mxu0 }
 0x584   :  { %v2423_v34 = vpop.f32.mrb[7].mxu0 }
 0x589   :  { %v474_v35 = vpop.f32.mrb[8].mxu0 }
 0x58a   :  { %v480_v37 = vpack.c.bf16 %v474_v35, %v474_v35  ;;  %v2434_v38 = vpop.f32.mrb[9].mxu0 }
 0x58b   :  { %v477_v39 = vpop.f32.mrb[10].mxu0 }
 0x58c   :  { %v2435_v40 = vpop.f32.mrb[11].mxu0  ;;  %2439 = vmatmul.mubr.msk.bf16.vlgmr.msra.gmra.mrb[8].mxu1 %vm252_vm2, %v480_v37 }
 0x58d   :  { %2443 = vmatpush3.bf16.msra.mxu1 %v2893_v36  ;;  %2444 = vmatprep.mubr.msk.bf16.mxu1 %vm2749_vm1, %v2748_v15 }
 0x58e   :  { %2460 = vmatprep.subr.bf16.mxu1 %v2748_v15 }
 0x592   :  { %v624_v43 = vpop.f32.mrb[12].mxu0 }
 0x593   :  { %v630_v44 = vmul.f32 0.25, %v624_v43  ;;  %v2452_v45 = vpop.f32.mrb[13].mxu0 }
 0x594   :  { %v627_v46 = vpop.f32.mrb[14].mxu0 }
 0x595   :  { %v2453_v49 = vpop.f32.mrb[15].mxu0  ;;  %v635_v52 = vadd.f32 %v2902_v42, %v630_v44 }
 0x597   :  { %v636_v54 = vsel %vm305_vm3, %v635_v52, -inf }
 0x598   :  { %637 = vmax.xlane.f32.xlu0 %v636_v54  ;;  %2445 = vmatmul.mubr.msk.bf16.vlgmr.msra.gmra.mrb[8].mxu1 %vm252_vm2, %v367_v53 }
 0x599   :  { %2461 = vmatpush3.bf16.xpose.msra.mxu1 %v705_v55  ;;  %2462 = vmatprep.mubr.msk.bf16.mxu1 %vm2749_vm1, %v2748_v15 }
 0x59a   :  { %2472 = vmatprep.subr.bf16.mxu1 %v2748_v15 }
 0x5a0   :  { %2463 = vmatmul.mubr.msk.bf16.vlgmr.msra.gmra.mrb[12].mxu1 %vm252_vm2, %v698_v48 }
 0x5a1   :  { %2473 = vmatpush3.bf16.msra.mxu1 %v2667_v28  ;;  %2474 = vmatprep.mubr.msk.bf16.mxu1 %vm2749_vm1, %v2748_v15 }
 0x5a2   :  { %2478 = vmatprep.subr.bf16.mxu1 %v2748_v15 }
 0x625   :  { %v638_v50 = vpop.xlane.xlu0 %637 }
 0x626   :  { %v639_v56 = vsub.f32 %v635_v52, %v638_v50 }
 0x628   :  { %v640_v57 = vmul.f32 1.442695, %v639_v56 }
 0x62a   :  { %2699 = vpow2.f32 %v640_v57 }
 0x634   :  { %v2700_v58 = vpop.eup %2699 }
 0x635   :  { %v642_v59 = vsel %vm305_vm3, %v2700_v58, 0.0 }
 0x636   :  { %643 = vadd.xlane.f32.xlu0 %v642_v59 }
 0x66b   :  { %v573_v60 = vpop.f32.mrb[8].mxu1 }
 0x66c   :  { %579 = vst.msk [vmem:[#allocation2] sm:$0xff] %vm131_vm0, %v573_v60  ;;  %v2446_v61 = vpop.f32.mrb[9].mxu1 }
 0x66d   :  { %v576_v62 = vpop.f32.mrb[10].mxu1  ;;  %v2670_v61 = vld [vmem:[%s2238_s12 + $0x8] sm:$0xff]  }
 0x66e   :  { %v2447_v63 = vpop.f32.mrb[11].mxu1 }
 0x673   :  { %v741_v0 = vpop.f32.mrb[12].mxu1  ;;  %v897_v8 = vld [vmem:[#allocation2] sm:$0xff] }
 0x674   :  { %v747_v1 = vmul.f32 0.25, %v741_v0  ;;  %v2464_v3 = vpop.f32.mrb[13].mxu1  ;;  %v906_v10 = vadd.f32 %v2279_v9, %v897_v8 }
 0x675   :  { %v744_v4 = vpop.f32.mrb[14].mxu1 }
 0x676   :  { %v2465_v5 = vpop.f32.mrb[15].mxu1  ;;  %v748_v6 = vadd.f32 %v747_v1, %v2902_v42  ;;  %v908_v11 = vadd.f32 %v906_v10, %v2813_v31 }
 0x678   :  { %v749_v7 = vsel %vm305_vm3, %v748_v6, -inf  ;;  %v912_v12 = vsel %vm131_vm0, %v908_v11, 0.0 }
 0x679   :  { %750 = vmax.xlane.f32.xlu1 %v749_v7  ;;  %v2280_v7 = vld [vmem:[%s2236_s16] ss:$0 sm:$0xff]  ;;  %s2769_s16 = smov 15  }
 0x67a   :  { %s2243_s19 = sld [smem:[%s3161_s0 + %s2769_s16]]  }
 0x68a   :  { %761 = vrot.lane.b32.xlu1 %v2861_v2, %s2758_s30 }
 0x6ae   :  { %913 = vadd.xlane.f32.xlu1 %v912_v12 }
 0x6c3   :  { %v644_v19 = vpop.xlane.xlu0 %643 }
 0x706   :  { %v751_v13 = vpop.xlane.xlu1 %750 }
 0x707   :  { %v752_v14 = vsub.f32 %v748_v6, %v751_v13 }
 0x709   :  { %v753_v16 = vmul.f32 1.442695, %v752_v14 }
 0x70a   :  { %v762_v24 = vpop.permute.xlu1 %761 }
 0x70b   :  { %2701 = vpow2.f32 %v753_v16  ;;  %v767_v26 = vsel %vm323_vm4, %v762_v24, 0 }
 0x70c   :  { %2703 = vrcp.f32 %v644_v19  ;;  %v2673_v19 = vld [vmem:[%s2240_s27 + $0x10] sm:$0xff]  }
 0x715   :  { %v2702_v17 = vpop.eup %2701 }
 0x716   :  { %v755_v18 = vsel %vm305_vm3, %v2702_v17, 0.0  ;;  %v2704_v20 = vpop.eup %2703 }
 0x717   :  { %756 = vadd.xlane.f32.xlu0 %v755_v18  ;;  %v646_v31 = vmul.f32 %v2704_v20, %v2700_v58  ;;  %v2672_v18 = vld [vmem:[%s2240_s27 + $0x8] sm:$0xff]   ;;  %v2674_v20 = vld [vmem:[%s2240_s27 + $0x18] sm:$0xff]  }
 0x719   :  { %v647_v25 = vpack.c.bf16 %v646_v31, %v646_v31 }
 0x72d   :  { %648 = vrot.lane.b32.xlu0 %v2861_v2, %s2757_s29 }
 0x73b   :  { %v914_v45 = vpop.xlane.xlu1 %913 }
 0x73c   :  { %v918_v49 = vmul.f32 0.03125, %v914_v45 }
 0x73e   :  { %v920_v52 = vsub.f32 %v908_v11, %v918_v49  ;;  %v2281_v11 = vld [vmem:[%s2237_s20] ss:$0 sm:$0xff]  ;;  %s2770_s20 = smov 17  }
 0x73f   :  { %s2245_s26 = sld [smem:[%s3161_s0 + %s2770_s20]]  }
 0x740   :  { %v922_v48 = vmul.f32 %v920_v52, %v920_v52 }
 0x742   :  { %v924_v50 = vsel %vm131_vm0, %v922_v48, 0.0 }
 0x7a4   :  { %v757_v21 = vpop.xlane.xlu0 %756 }
 0x7a5   :  { %2705 = vrcp.f32 %v757_v21  ;;  %v2282_v21 = vld [vmem:[%s2239_s3] ss:$0 sm:$0xff]  ;;  %s2247_s3 = sld [smem:[%s3161_s0 + %s2772_s28]]  }
 0x7a8   :  { %v649_v22 = vpop.permute.xlu0 %648 }
 0x7a9   :  { %v654_v23 = vsel %vm323_vm4, %v649_v22, 0 }
 0x7aa   :  { %2455 = vmatpush3.bf16.msra.mxu0 %v654_v23 }
 0x7ab   :  { %2466 = vmatprep.subr.bf16.mxu0 %v2748_v15 }
 0x7ad   :  { %2457 = vmatmul.mubr.msk.bf16.vlgmr.msra.gmra.mrb[16].mxu0 %vm305_vm3, %v647_v25 }
 0x7ae   :  { %2467 = vmatpush3.bf16.msra.mxu0 %v767_v26  ;;  %2468 = vmatprep.mubr.msk.bf16.mxu0 %vm2749_vm1, %v2748_v15 }
 0x7af   :  { %v2706_v2 = vpop.eup %2705  ;;  %2484 = vmatprep.subr.bf16.mxu0 %v2748_v15 }
 0x7b0   :  { %v759_v27 = vmul.f32 %v2706_v2, %v2702_v17  ;;  %v2671_v17 = vld [vmem:[%s2240_s27] sm:$0xff]  }
 0x7b2   :  { %v760_v28 = vpack.c.bf16 %v759_v27, %v759_v27 }
 0x7b5   :  { %2469 = vmatmul.mubr.msk.bf16.vlgmr.msra.gmra.mrb[20].mxu0 %vm305_vm3, %v760_v28 }
 0x7b6   :  { %2488 = vmatprep.mubr.msk.bf16.mxu0 %vm2749_vm1, %v2748_v15 }
 0x880   :  { %v690_v29 = vpop.f32.mrb[16].mxu0 }
 0x881   :  { %v2458_v30 = vpop.f32.mrb[17].mxu0  ;;  %v696_v41 = vpack.c.bf16 %v690_v29, %v690_v29 }
 0x882   :  { %v693_v33 = vpop.f32.mrb[18].mxu0 }
 0x883   :  { %v2459_v34 = vpop.f32.mrb[19].mxu0 }
 0x888   :  { %v803_v35 = vpop.f32.mrb[20].mxu0 }
 0x889   :  { %v809_v37 = vpack.c.bf16 %v803_v35, %v803_v35  ;;  %v2470_v38 = vpop.f32.mrb[21].mxu0 }
 0x88a   :  { %v806_v39 = vpop.f32.mrb[22].mxu0 }
 0x88b   :  { %v2471_v40 = vpop.f32.mrb[23].mxu0  ;;  %2475 = vmatmul.mubr.msk.bf16.vlgmr.msra.gmra.mrb[16].mxu1 %vm252_vm2, %v809_v37 }
 0x88c   :  { %2479 = vmatpush3.bf16.msra.mxu1 %v2893_v36  ;;  %2480 = vmatprep.mubr.msk.bf16.mxu1 %vm2749_vm1, %v2748_v15 }
 0x88d   :  { %2504 = vmatprep.subr.bf16.mxu1 %v2748_v15 }
 0x897   :  { %2481 = vmatmul.mubr.msk.bf16.vlgmr.msra.gmra.mrb[16].mxu1 %vm252_vm2, %v696_v41 }
 0x898   :  { %2508 = vmatprep.mubr.msk.bf16.mxu1 %vm2749_vm1, %v2748_v15 }
 0x96a   :  { %v890_v43 = vpop.f32.mrb[16].mxu1 }
 0x96b   :  { %896 = vst.msk [vmem:[#allocation2 + $0x8] sm:$0xff] %vm131_vm0, %v890_v43  ;;  %v2482_v44 = vpop.f32.mrb[17].mxu1 }
 0x96c   :  { %v893_v46 = vpop.f32.mrb[18].mxu1 }
 0x96d   :  { %v2483_v47 = vpop.f32.mrb[19].mxu1 }
 0x972   :  { %v898_v36 = vld [vmem:[#allocation2 + $0x8] sm:$0xff] }
 0x973   :  { %v907_v53 = vadd.f32 %v2279_v9, %v898_v36  ;;  %v2286_v36 = vld [vmem:[%s2241_s7] ss:$0 sm:$0xff]  ;;  %s2255_s7 = sld [smem:[%s3161_s0 + %s2781_s4]]  }
 0x975   :  { %v909_v54 = vadd.f32 %v907_v53, %v2815_v32  ;;  %v2669_v32 = vld [vmem:[%s2238_s12] sm:$0xff]   ;;  %s2768_s12 = smov 14  }
 0x976   :  { %2485 = vmatpush3.bf16.msra.mxu0 %v2669_v32  ;;  %s2242_s15 = sld [smem:[%s3161_s0 + %s2768_s12]]   ;;  %s2783_s12 = smov 30  }
 0x977   :  { %v915_v55 = vsel %vm131_vm0, %v909_v54, 0.0  ;;  %2486 = vmatprep.subr.bf16.mxu0 %v2748_v15 }
 0x978   :  { %916 = vadd.xlane.f32.xlu0 %v915_v55 }
 0x97a   :  { %2487 = vmatpush3.bf16.msra.mxu0 %v2670_v61 }
 0x97b   :  { %2492 = vmatprep.subr.bf16.mxu0 %v2748_v15 }
 0x97c   :  { %925 = vadd.xlane.f32.xlu0 %v924_v50 }
 0xa05   :  { %v917_v56 = vpop.xlane.xlu0 %916 }
 0xa06   :  { %v919_v57 = vmul.f32 0.03125, %v917_v56 }
 0xa08   :  { %v921_v58 = vsub.f32 %v909_v54, %v919_v57 }
 0xa09   :  { %v926_v62 = vpop.xlane.xlu0 %925 }
 0xa0a   :  { %v923_v59 = vmul.f32 %v921_v58, %v921_v58  ;;  %v930_v63 = vmul.f32 0.03125, %v926_v62 }
 0xa0c   :  { %v927_v60 = vsel %vm131_vm0, %v923_v59, 0.0  ;;  %v932_v0 = vadd.f32 1e-12, %v930_v63 }
 0xa0d   :  { %928 = vadd.xlane.f32.xlu1 %v927_v60 }
 0xa0e   :  { %2707 = vrsqrt.f32 %v932_v0 }
 0xa18   :  { %v2708_v5 = vpop.eup %2707 }
 0xa19   :  { %v936_v6 = vmul.f32 %v2708_v5, %v920_v52 }
 0xa1b   :  { %v944_v9 = vmul.f32 %v2280_v7, %v936_v6  ;;  %v2675_v6 = vld [vmem:[%s2244_s11] sm:$0xff]  }
 0xa1c   :  { %2505 = vmatpush3.bf16.msra.mxu1 %v2675_v6 }
 0xa1d   :  { %v952_v13 = vadd.f32 %v2281_v11, %v944_v9  ;;  %2506 = vmatprep.subr.bf16.mxu1 %v2748_v15 }
 0xa9a   :  { %v929_v1 = vpop.xlane.xlu1 %928 }
 0xa9b   :  { %v931_v3 = vmul.f32 0.03125, %v929_v1 }
 0xa9d   :  { %v933_v4 = vadd.f32 1e-12, %v931_v3 }
 0xa9f   :  { %2709 = vrsqrt.f32 %v933_v4 }
 0xaa9   :  { %v2710_v8 = vpop.eup %2709 }
 0xaaa   :  { %v937_v10 = vmul.f32 %v2710_v8, %v921_v58 }
 0xaac   :  { %v945_v12 = vmul.f32 %v2280_v7, %v937_v10  ;;  %v2676_v7 = vld [vmem:[%s2244_s11 + $0x8] sm:$0xff]   ;;  %s2257_s11 = sld [smem:[%s3161_s0 + %s2782_s8]]  }
 0xaad   :  { %2507 = vmatpush3.bf16.msra.mxu1 %v2676_v7 }
 0xaae   :  { %v953_v14 = vadd.f32 %v2281_v11, %v945_v12  ;;  %2512 = vmatprep.subr.bf16.mxu1 %v2748_v15 }
 0xab0   :  { %v954_v16 = vpack.c.bf16 %v953_v14, %v952_v13 }
 0xab2   :  { %2489 = vmatmul.mubr.msk.bf16.vlgmr.msra.gmra.mrb[24].mxu0 %vm131_vm0, %v954_v16  ;;  %v2292_v16 = vld [vmem:[%s2242_s15] ss:$0 sm:$0xff]  ;;  %s2258_s15 = sld [smem:[%s3161_s0 + %s2783_s12]]  }
 0xab3   :  { %2500 = vmatprep.mubr.msk.bf16.mxu0 %vm2749_vm1, %v2748_v15  ;;  %2493 = vmatpush3.bf16.msra.mxu0 %v2671_v17 }
 0xab4   :  { %2494 = vmatprep.subr.bf16.mxu0 %v2748_v15 }
 0xab7   :  { %2495 = vmatpush3.bf16.msra.mxu0 %v2672_v18 }
 0xab8   :  { %2496 = vmatprep.subr.bf16.mxu0 %v2748_v15 }
 0xabb   :  { %2497 = vmatpush3.bf16.msra.mxu0 %v2673_v19 }
 0xabc   :  { %2498 = vmatprep.subr.bf16.mxu0 %v2748_v15 }
 0xabf   :  { %2499 = vmatpush3.bf16.msra.mxu0 %v2674_v20 }
 0xac0   :  { %2518 = vmatprep.subr.bf16.mxu0 %v2748_v15 }
 0xb85   :  { %v1015_v31 = vpop.f32.mrb[24].mxu0 }
 0xb86   :  { %v1016_v22 = vadd.f32 %v2282_v21, %v1015_v31  ;;  %v2490_v23 = vpop.f32.mrb[25].mxu0 }
 0xb87   :  { %v1018_v24 = vpop.f32.mrb[26].mxu0 }
 0xb88   :  { %v1024_v25 = vmul.f32 0.044715, %v1016_v22  ;;  %v1019_v26 = vadd.f32 %v2282_v21, %v1018_v24  ;;  %v2491_v2 = vpop.f32.mrb[27].mxu0  ;;  %v1022_v43 = vmul.f32 0.5, %v1016_v22  ;;  %v2293_v21 = vld [vmem:[%s2243_s19] ss:$0 sm:$0xff] }
 0xb8a   :  { %v1026_v27 = vmul.f32 %v1024_v25, %v1016_v22  ;;  %v1025_v28 = vmul.f32 0.044715, %v1019_v26  ;;  %v1023_v44 = vmul.f32 0.5, %v1019_v26  ;;  %v2294_v25 = vld [vmem:[%s2245_s26] ss:$0 sm:$0xff] }
 0xb8c   :  { %v1028_v29 = vmul.f32 %v1026_v27, %v1016_v22  ;;  %v1027_v30 = vmul.f32 %v1025_v28, %v1019_v26 }
 0xb8e   :  { %v1030_v33 = vadd.f32 %v1028_v29, %v1016_v22  ;;  %v1029_v34 = vmul.f32 %v1027_v30, %v1019_v26 }
 0xb90   :  { %v1032_v35 = vmul.f32 0.7978846, %v1030_v33  ;;  %v1031_v37 = vadd.f32 %v1029_v34, %v1019_v26 }
 0xb92   :  { %2711 = vtanh.f32 %v1032_v35  ;;  %v1033_v38 = vmul.f32 0.7978846, %v1031_v37 }
 0xb94   :  { %2713 = vtanh.f32 %v1033_v38 }
 0xb9c   :  { %v2712_v39 = vpop.eup %2711 }
 0xb9d   :  { %v1036_v40 = vadd.f32 1.0, %v2712_v39 }
 0xb9e   :  { %v2714_v41 = vpop.eup %2713 }
 0xb9f   :  { %v1037_v45 = vadd.f32 1.0, %v2714_v41  ;;  %v1038_v46 = vmul.f32 %v1036_v40, %v1022_v43 }
 0xba1   :  { %v1039_v47 = vmul.f32 %v1037_v45, %v1023_v44 }
 0xba3   :  { %v1040_v49 = vpack.c.bf16 %v1039_v47, %v1038_v46 }
 0xba5   :  { %2501 = vmatmul.mubr.msk.bf16.vlgmr.msra.gmra.mrb[28].mxu0 %vm1080_vm5, %v1040_v49 }
 0xba6   :  { %2520 = vmatprep.mubr.msk.bf16.mxu0 %vm2749_vm1, %v2748_v15 }
 0xc78   :  { %v1118_v52 = vpop.f32.mrb[28].mxu0 }
 0xc79   :  { %v1119_v53 = vadd.f32 %v2286_v36, %v1118_v52  ;;  %v2502_v54 = vpop.f32.mrb[29].mxu0 }
 0xc7a   :  { %v1121_v55 = vpop.f32.mrb[30].mxu0 }
 0xc7b   :  { %v1122_v48 = vadd.f32 %v2286_v36, %v1121_v55  ;;  %v2503_v50 = vpop.f32.mrb[31].mxu0  ;;  %v1125_v56 = vadd.f32 %v1119_v53, %v952_v13 }
 0xc7d   :  { %v1129_v57 = vsel %vm131_vm0, %v1125_v56, 0.0  ;;  %v1126_v58 = vadd.f32 %v1122_v48, %v953_v14 }
 0xc7e   :  { %1130 = vadd.xlane.f32.xlu0 %v1129_v57 }
 0xc7f   :  { %v1132_v59 = vsel %vm131_vm0, %v1126_v58, 0.0 }
 0xc80   :  { %1133 = vadd.xlane.f32.xlu1 %v1132_v59 }
 0xd0b   :  { %v1131_v60 = vpop.xlane.xlu0 %1130 }
 0xd0c   :  { %v1135_v32 = vmul.f32 0.03125, %v1131_v60 }
 0xd0d   :  { %v1134_v61 = vpop.xlane.xlu1 %1133 }
 0xd0e   :  { %v1137_v62 = vsub.f32 %v1125_v56, %v1135_v32  ;;  %v1136_v63 = vmul.f32 0.03125, %v1134_v61 }
 0xd10   :  { %v1138_v0 = vsub.f32 %v1126_v58, %v1136_v63  ;;  %v1139_v1 = vmul.f32 %v1137_v62, %v1137_v62 }
 0xd12   :  { %v1141_v3 = vsel %vm131_vm0, %v1139_v1, 0.0  ;;  %v1140_v4 = vmul.f32 %v1138_v0, %v1138_v0 }
 0xd13   :  { %1142 = vadd.xlane.f32.xlu0 %v1141_v3 }
 0xd14   :  { %v1144_v5 = vsel %vm131_vm0, %v1140_v4, 0.0 }
 0xd15   :  { %1145 = vadd.xlane.f32.xlu1 %v1144_v5 }
 0xda0   :  { %v1143_v8 = vpop.xlane.xlu0 %1142 }
 0xda1   :  { %v1147_v9 = vmul.f32 0.03125, %v1143_v8 }
 0xda2   :  { %v1146_v10 = vpop.xlane.xlu1 %1145 }
 0xda3   :  { %v1149_v11 = vadd.f32 1e-12, %v1147_v9  ;;  %v1148_v12 = vmul.f32 0.03125, %v1146_v10 }
 0xda5   :  { %2715 = vrsqrt.f32 %v1149_v11  ;;  %v1150_v13 = vadd.f32 1e-12, %v1148_v12 }
 0xda7   :  { %2717 = vrsqrt.f32 %v1150_v13 }
 0xdaf   :  { %v2716_v14 = vpop.eup %2715 }
 0xdb0   :  { %v1153_v17 = vmul.f32 %v2716_v14, %v1137_v62 }
 0xdb1   :  { %v2718_v18 = vpop.eup %2717 }
 0xdb2   :  { %v1161_v19 = vmul.f32 %v2292_v16, %v1153_v17  ;;  %v1154_v20 = vmul.f32 %v2718_v18, %v1138_v0 }
 0xdb4   :  { %v1162_v31 = vmul.f32 %v2292_v16, %v1154_v20  ;;  %v2997_v22 = vadd.f32 %v2293_v21, %v1161_v19 }
 0xdb6   :  { %v2999_v23 = vadd.f32 %v2293_v21, %v1162_v31 }
 0xdb8   :  { %v1171_v24 = vpack.c.bf16 %v2999_v23, %v2997_v22 }
 0xdba   :  { %2509 = vmatmul.mubr.msk.bf16.vlgmr.msra.gmra.mrb[20].mxu1 %vm131_vm0, %v1171_v24 }
 0xdbb   :  { %2514 = vmatprep.mubr.msk.bf16.mxu1 %vm2749_vm1, %v2748_v15 }
 0xe8d   :  { %v1232_v26 = vpop.f32.mrb[20].mxu1 }
 0xe8e   :  { %v1233_v2 = vadd.f32 %v2294_v25, %v1232_v26  ;;  %v2510_v27 = vpop.f32.mrb[21].mxu1 }
 0xe8f   :  { %v1235_v28 = vpop.f32.mrb[22].mxu1 }
 0xe90   :  { %v1243_v29 = vpack.c.bf16 %v1233_v2, %v1233_v2  ;;  %v1236_v30 = vadd.f32 %v2294_v25, %v1235_v28  ;;  %v2511_v33 = vpop.f32.mrb[23].mxu1 }
 0xe92   :  { %1358 = vrot.lane.b32.xlu1 %v1243_v29, %s2753_s22  ;;  %1245 = vrot.lane.b32.xlu0 %v1243_v29, %s2754_s23  ;;  %v3027_v50 = vpack.c.bf16 %v1236_v30, %v1236_v30 }
 0xe96   :  { %1356 = vrot.lane.b32.xlu1 %v1243_v29, %s2755_s24 }
 0xf04   :  { %v1246_v34 = vpop.permute.xlu0 %1245  ;;  %v1359_v37 = vpop.permute.xlu1 %1358 }
 0xf05   :  { %v1251_v35 = vsel %vm252_vm2, %v1246_v34, 0  ;;  %v1364_v38 = vsel %vm252_vm2, %v1359_v37, 0 }
 0xf06   :  { %2513 = vmatpush3.bf16.xpose.msra.mxu1 %v1251_v35 }
 0xf07   :  { %2524 = vmatprep.subr.bf16.mxu1 %v2748_v15 }
 0xf08   :  { %v1357_v39 = vpop.permute.xlu1 %1356 }
 0xf0d   :  { %2515 = vmatmul.mubr.msk.bf16.vlgmr.msra.gmra.mrb[24].mxu1 %vm252_vm2, %v1243_v29 }
 0xf0e   :  { %2525 = vmatpush3.bf16.xpose.msra.mxu1 %v1364_v38  ;;  %2526 = vmatprep.mubr.msk.bf16.mxu1 %vm2749_vm1, %v2748_v15 }
 0xf0f   :  { %2536 = vmatprep.subr.bf16.mxu1 %v2748_v15 }
 0xf15   :  { %2527 = vmatmul.mubr.msk.bf16.vlgmr.msra.gmra.mrb[28].mxu1 %vm252_vm2, %v1357_v39 }
 0xf16   :  { %2538 = vmatprep.mubr.msk.bf16.mxu1 %vm2749_vm1, %v2748_v15 }
 0xfe0   :  { %v1287_v40 = vpop.f32.mrb[24].mxu1 }
 0xfe1   :  { %v1293_v41 = vmul.f32 0.25, %v1287_v40  ;;  %v2516_v43 = vpop.f32.mrb[25].mxu1 }
 0xfe2   :  { %v1290_v44 = vpop.f32.mrb[26].mxu1 }
 0xfe3   :  { %v2517_v45 = vpop.f32.mrb[27].mxu1  ;;  %v1294_v46 = vadd.f32 %v1293_v41, %v2853_v51 }
 0xfe5   :  { %v1295_v47 = vsel %vm305_vm3, %v1294_v46, -inf }
 0xfe6   :  { %1296 = vmax.xlane.f32.xlu1 %v1295_v47 }
 0xfe8   :  { %v1400_v49 = vpop.f32.mrb[28].mxu1 }
 0xfe9   :  { %v1406_v36 = vmul.f32 0.25, %v1400_v49  ;;  %v2528_v52 = vpop.f32.mrb[29].mxu1 }
 0xfea   :  { %v1403_v53 = vpop.f32.mrb[30].mxu1 }
 0xfeb   :  { %v2529_v54 = vpop.f32.mrb[31].mxu1  ;;  %v1407_v55 = vadd.f32 %v1406_v36, %v2853_v51 }
 0xfed   :  { %v1408_v48 = vsel %vm305_vm3, %v1407_v55, -inf }
 0xfee   :  { %1409 = vmax.xlane.f32.xlu0 %v1408_v48 }
 0xff7   :  { %1307 = vrot.lane.b32.xlu1 %v1243_v29, %s2757_s29 }
 0xffb   :  { %1570 = vrot.lane.b32.xlu1 %v3027_v50, %s2754_s23  ;;  %s2253_s23 = sld [smem:[%s3161_s0 + %s2778_s25]]  }
 0xfff   :  { %1683 = vrot.lane.b32.xlu1 %v3027_v50, %s2753_s22  ;;  %s2771_s22 = smov 18  }
0x1000   :  { %s2246_s27 = sld [smem:[%s3161_s0 + %s2771_s22]]  }
0x1003   :  { %1681 = vrot.lane.b32.xlu1 %v3027_v50, %s2755_s24  ;;  %s2779_s24 = smov 28  }
0x1004   :  { %s2256_s1 = sld [smem:[%s3161_s0 + %s2779_s24]]  }
0x1006   :  { %v2677_v16 = vld [vmem:[%s2246_s27 + $0x8] sm:$0xff]   ;;  %v3058_v31 = vld [vmem:[%s2246_s27] sm:$0xff]  }
0x1007   :  { %2537 = vmatpush3.bf16.msra.mxu1 %v2677_v16 }
0x1008   :  { %2542 = vmatprep.subr.bf16.mxu1 %v2748_v15 }
0x1073   :  { %v1297_v56 = vpop.xlane.xlu1 %1296 }
0x1074   :  { %v1298_v57 = vsub.f32 %v1294_v46, %v1297_v56 }
0x1076   :  { %v1299_v58 = vmul.f32 1.442695, %v1298_v57 }
0x1077   :  { %v1308_v51 = vpop.permute.xlu1 %1307 }
0x1078   :  { %2719 = vpow2.f32 %v1299_v58  ;;  %v1313_v59 = vsel %vm323_vm4, %v1308_v51, 0 }
0x1079   :  { %2519 = vmatpush3.bf16.msra.mxu0 %v1313_v59  ;;  %v2312_v59 = vld [vmem:[%s2247_s3] ss:$0 sm:$0xff] }
0x107a   :  { %2530 = vmatprep.subr.bf16.mxu0 %v2748_v15 }
0x107b   :  { %v1410_v60 = vpop.xlane.xlu0 %1409  ;;  %v1571_v12 = vpop.permute.xlu1 %1570 }
0x107c   :  { %v1411_v32 = vsub.f32 %v1407_v55, %v1410_v60  ;;  %v1576_v14 = vsel %vm252_vm2, %v1571_v12, 0 }
0x107e   :  { %v1412_v61 = vmul.f32 1.442695, %v1411_v32 }
0x107f   :  { %v1684_v33 = vpop.permute.xlu1 %1683 }
0x1080   :  { %2721 = vpow2.f32 %v1412_v61  ;;  %v1689_v39 = vsel %vm252_vm2, %v1684_v33, 0 }
0x1082   :  { %v2720_v62 = vpop.eup %2719 }
0x1083   :  { %v1301_v63 = vsel %vm305_vm3, %v2720_v62, 0.0  ;;  %v1682_v40 = vpop.permute.xlu1 %1681 }
0x1084   :  { %1302 = vadd.xlane.f32.xlu0 %v1301_v63 }
0x108a   :  { %v2722_v0 = vpop.eup %2721 }
0x108b   :  { %v1414_v1 = vsel %vm305_vm3, %v2722_v0, 0.0 }
0x108c   :  { %1415 = vadd.xlane.f32.xlu0 %v1414_v1 }
0x10a2   :  { %1420 = vrot.lane.b32.xlu0 %v1243_v29, %s2758_s30 }
0x1111   :  { %v1303_v3 = vpop.xlane.xlu0 %1302 }
0x1112   :  { %2723 = vrcp.f32 %v1303_v3 }
0x1119   :  { %v1416_v4 = vpop.xlane.xlu0 %1415 }
0x111a   :  { %2725 = vrcp.f32 %v1416_v4 }
0x111c   :  { %v2724_v5 = vpop.eup %2723 }
0x111d   :  { %v1305_v6 = vmul.f32 %v2724_v5, %v2720_v62  ;;  %v1421_v7 = vpop.permute.xlu0 %1420 }
0x111e   :  { %v1426_v9 = vsel %vm323_vm4, %v1421_v7, 0 }
0x111f   :  { %v1306_v8 = vpack.c.bf16 %v1305_v6, %v1305_v6 }
0x1121   :  { %2521 = vmatmul.mubr.msk.bf16.vlgmr.msra.gmra.mrb[32].mxu0 %vm305_vm3, %v1306_v8 }
0x1122   :  { %2531 = vmatpush3.bf16.msra.mxu0 %v1426_v9  ;;  %2532 = vmatprep.mubr.msk.bf16.mxu0 %vm2749_vm1, %v2748_v15 }
0x1123   :  { %2548 = vmatprep.subr.bf16.mxu0 %v2748_v15 }
0x1124   :  { %v2726_v10 = vpop.eup %2725 }
0x1125   :  { %v1418_v11 = vmul.f32 %v2726_v10, %v2722_v0 }
0x1127   :  { %v1419_v13 = vpack.c.bf16 %v1418_v11, %v1418_v11 }
0x1129   :  { %2533 = vmatmul.mubr.msk.bf16.vlgmr.msra.gmra.mrb[36].mxu0 %vm305_vm3, %v1419_v13 }
0x112a   :  { %2550 = vmatprep.mubr.msk.bf16.mxu0 %vm2749_vm1, %v2748_v15 }
0x112b   :  { %2549 = vmatpush3.bf16.xpose.msra.mxu0 %v1576_v14 }
0x112c   :  { %2554 = vmatprep.subr.bf16.mxu0 %v2748_v15 }
0x1132   :  { %2551 = vmatmul.mubr.msk.bf16.vlgmr.msra.gmra.mrb[40].mxu0 %vm252_vm2, %v3027_v50 }
0x1133   :  { %2556 = vmatprep.mubr.msk.bf16.mxu0 %vm2749_vm1, %v2748_v15 }
0x11f4   :  { %v1349_v17 = vpop.f32.mrb[32].mxu0 }
0x11f5   :  { %v2522_v18 = vpop.f32.mrb[33].mxu0  ;;  %v1355_v37 = vpack.c.bf16 %v1349_v17, %v1349_v17 }
0x11f6   :  { %v1352_v19 = vpop.f32.mrb[34].mxu0 }
0x11f7   :  { %v2523_v20 = vpop.f32.mrb[35].mxu0 }
0x11fc   :  { %v1462_v21 = vpop.f32.mrb[36].mxu0 }
0x11fd   :  { %v1468_v24 = vpack.c.bf16 %v1462_v21, %v1462_v21  ;;  %v2534_v25 = vpop.f32.mrb[37].mxu0 }
0x11fe   :  { %v1465_v26 = vpop.f32.mrb[38].mxu0 }
0x11ff   :  { %v2535_v2 = vpop.f32.mrb[39].mxu0  ;;  %2539 = vmatmul.mubr.msk.bf16.vlgmr.msra.gmra.mrb[32].mxu1 %vm252_vm2, %v1468_v24 }
0x1200   :  { %2543 = vmatpush3.bf16.msra.mxu1 %v3058_v31  ;;  %2544 = vmatprep.mubr.msk.bf16.mxu1 %vm2749_vm1, %v2748_v15 }
0x1201   :  { %2560 = vmatprep.subr.bf16.mxu1 %v2748_v15 }
0x1205   :  { %v1612_v27 = vpop.f32.mrb[40].mxu0 }
0x1206   :  { %v1618_v28 = vmul.f32 0.25, %v1612_v27  ;;  %v2552_v29 = vpop.f32.mrb[41].mxu0 }
0x1207   :  { %v1615_v30 = vpop.f32.mrb[42].mxu0 }
0x1208   :  { %v2553_v34 = vpop.f32.mrb[43].mxu0  ;;  %v1619_v35 = vadd.f32 %v1618_v28, %v2902_v42 }
0x120a   :  { %v1620_v38 = vsel %vm305_vm3, %v1619_v35, -inf }
0x120b   :  { %1621 = vmax.xlane.f32.xlu0 %v1620_v38  ;;  %2545 = vmatmul.mubr.msk.bf16.vlgmr.msra.gmra.mrb[32].mxu1 %vm252_vm2, %v1355_v37 }
0x120c   :  { %2561 = vmatpush3.bf16.xpose.msra.mxu1 %v1689_v39  ;;  %2562 = vmatprep.mubr.msk.bf16.mxu1 %vm2749_vm1, %v2748_v15 }
0x120d   :  { %2572 = vmatprep.subr.bf16.mxu1 %v2748_v15 }
0x1213   :  { %2563 = vmatmul.mubr.msk.bf16.vlgmr.msra.gmra.mrb[36].mxu1 %vm252_vm2, %v1682_v40 }
0x1214   :  { %2573 = vmatpush3.bf16.msra.mxu1 %v2677_v16  ;;  %2574 = vmatprep.mubr.msk.bf16.mxu1 %vm2749_vm1, %v2748_v15 }
0x1215   :  { %2578 = vmatprep.subr.bf16.mxu1 %v2748_v15 }
0x1298   :  { %v1622_v41 = vpop.xlane.xlu0 %1621 }
0x1299   :  { %v1623_v43 = vsub.f32 %v1619_v35, %v1622_v41 }
0x129b   :  { %v1624_v44 = vmul.f32 1.442695, %v1623_v43 }
0x129d   :  { %2727 = vpow2.f32 %v1624_v44 }
0x12a7   :  { %v2728_v45 = vpop.eup %2727 }
0x12a8   :  { %v1626_v46 = vsel %vm305_vm3, %v2728_v45, 0.0 }
0x12a9   :  { %1627 = vadd.xlane.f32.xlu0 %v1626_v46 }
0x12de   :  { %v1561_v47 = vpop.f32.mrb[32].mxu1 }
0x12df   :  { %1567 = vst.msk [vmem:[#allocation2] sm:$0xff] %vm131_vm0, %v1561_v47  ;;  %v2546_v49 = vpop.f32.mrb[33].mxu1 }
0x12e0   :  { %v1564_v36 = vpop.f32.mrb[34].mxu1 }
0x12e1   :  { %v2547_v52 = vpop.f32.mrb[35].mxu1 }
0x12e6   :  { %v1725_v53 = vpop.f32.mrb[36].mxu1  ;;  %v1881_v51 = vld [vmem:[#allocation2] sm:$0xff] }
0x12e7   :  { %v1731_v54 = vmul.f32 0.25, %v1725_v53  ;;  %v2564_v55 = vpop.f32.mrb[37].mxu1  ;;  %v1890_v60 = vadd.f32 %v2312_v59, %v1881_v51 }
0x12e8   :  { %v1728_v48 = vpop.f32.mrb[38].mxu1 }
0x12e9   :  { %v2565_v56 = vpop.f32.mrb[39].mxu1  ;;  %v1732_v57 = vadd.f32 %v1731_v54, %v2902_v42  ;;  %v1892_v32 = vadd.f32 %v1890_v60, %v2997_v22 }
0x12ea   :  { %v2313_v56 = vld [vmem:[%s2248_s9] ss:$0 sm:$0xff] }
0x12eb   :  { %v1733_v58 = vsel %vm305_vm3, %v1732_v57, -inf  ;;  %v1896_v61 = vsel %vm131_vm0, %v1892_v32, 0.0 }
0x12ec   :  { %1734 = vmax.xlane.f32.xlu1 %v1733_v58 }
0x12fd   :  { %1745 = vrot.lane.b32.xlu1 %v3027_v50, %s2758_s30  ;;  %s2254_s30 = sld [smem:[%s3161_s0 + %s2780_s2]]  }
0x1321   :  { %1897 = vadd.xlane.f32.xlu1 %v1896_v61 }
0x1336   :  { %v1628_v3 = vpop.xlane.xlu0 %1627 }
0x1379   :  { %v1735_v42 = vpop.xlane.xlu1 %1734 }
0x137a   :  { %v1736_v62 = vsub.f32 %v1732_v57, %v1735_v42 }
0x137c   :  { %v1737_v63 = vmul.f32 1.442695, %v1736_v62  ;;  %v2681_v62 = vld [vmem:[%s2252_s17] sm:$0xff]  }
0x137d   :  { %v1746_v8 = vpop.permute.xlu1 %1745 }
0x137e   :  { %2729 = vpow2.f32 %v1737_v63  ;;  %v1751_v10 = vsel %vm323_vm4, %v1746_v8, 0  ;;  %v2682_v63 = vld [vmem:[%s2252_s17 + $0x8] sm:$0xff]  }
0x137f   :  { %2731 = vrcp.f32 %v1628_v3  ;;  %v2315_v3 = vld [vmem:[%s2251_s21] ss:$0 sm:$0xff] }
0x1388   :  { %v2730_v0 = vpop.eup %2729 }
0x1389   :  { %v1739_v1 = vsel %vm305_vm3, %v2730_v0, 0.0  ;;  %v2732_v4 = vpop.eup %2731 }
0x138a   :  { %1740 = vadd.xlane.f32.xlu0 %v1739_v1  ;;  %v1630_v22 = vmul.f32 %v2732_v4, %v2728_v45  ;;  %v2684_v1 = vld [vmem:[%s2252_s17 + $0x18] sm:$0xff]  }
0x138c   :  { %v1631_v9 = vpack.c.bf16 %v1630_v22, %v1630_v22 }
0x13a0   :  { %1632 = vrot.lane.b32.xlu0 %v3027_v50, %s2757_s29  ;;  %s2773_s29 = smov 22  }
0x13a1   :  { %s2250_s5 = sld [smem:[%s3161_s0 + %s2773_s29]]  }
0x13a7   :  { %v2680_v46 = vld [vmem:[%s2250_s5 + $0x8] sm:$0xff]  }
0x13ae   :  { %v1898_v27 = vpop.xlane.xlu1 %1897 }
0x13af   :  { %v1902_v30 = vmul.f32 0.03125, %v1898_v27 }
0x13b1   :  { %v1904_v33 = vsub.f32 %v1892_v32, %v1902_v30 }
0x13b3   :  { %v1906_v38 = vmul.f32 %v1904_v33, %v1904_v33 }
0x13b5   :  { %v1908_v39 = vsel %vm131_vm0, %v1906_v38, 0.0 }
0x1417   :  { %v1741_v5 = vpop.xlane.xlu0 %1740 }
0x1418   :  { %2733 = vrcp.f32 %v1741_v5 }
0x141b   :  { %v1633_v6 = vpop.permute.xlu0 %1632 }
0x141c   :  { %v1638_v7 = vsel %vm323_vm4, %v1633_v6, 0 }
0x141d   :  { %2555 = vmatpush3.bf16.msra.mxu0 %v1638_v7 }
0x141e   :  { %2566 = vmatprep.subr.bf16.mxu0 %v2748_v15 }
0x1420   :  { %2557 = vmatmul.mubr.msk.bf16.vlgmr.msra.gmra.mrb[44].mxu0 %vm305_vm3, %v1631_v9 }
0x1421   :  { %2567 = vmatpush3.bf16.msra.mxu0 %v1751_v10  ;;  %2568 = vmatprep.mubr.msk.bf16.mxu0 %vm2749_vm1, %v2748_v15 }
0x1422   :  { %v2734_v50 = vpop.eup %2733  ;;  %2584 = vmatprep.subr.bf16.mxu0 %v2748_v15 }
0x1423   :  { %v1743_v11 = vmul.f32 %v2734_v50, %v2730_v0  ;;  %v2683_v0 = vld [vmem:[%s2252_s17 + $0x10] sm:$0xff]  }
0x1425   :  { %v1744_v12 = vpack.c.bf16 %v1743_v11, %v1743_v11 }
0x1428   :  { %2569 = vmatmul.mubr.msk.bf16.vlgmr.msra.gmra.mrb[48].mxu0 %vm305_vm3, %v1744_v12 }
0x1429   :  { %2588 = vmatprep.mubr.msk.bf16.mxu0 %vm2749_vm1, %v2748_v15 }
0x14f3   :  { %v1674_v13 = vpop.f32.mrb[44].mxu0 }
0x14f4   :  { %v2558_v14 = vpop.f32.mrb[45].mxu0  ;;  %v1680_v25 = vpack.c.bf16 %v1674_v13, %v1674_v13 }
0x14f5   :  { %v1677_v16 = vpop.f32.mrb[46].mxu0 }
0x14f6   :  { %v2559_v17 = vpop.f32.mrb[47].mxu0 }
0x14fb   :  { %v1787_v18 = vpop.f32.mrb[48].mxu0 }
0x14fc   :  { %v1793_v19 = vpack.c.bf16 %v1787_v18, %v1787_v18  ;;  %v2570_v20 = vpop.f32.mrb[49].mxu0 }
0x14fd   :  { %v1790_v21 = vpop.f32.mrb[50].mxu0 }
0x14fe   :  { %v2571_v24 = vpop.f32.mrb[51].mxu0  ;;  %2575 = vmatmul.mubr.msk.bf16.vlgmr.msra.gmra.mrb[40].mxu1 %vm252_vm2, %v1793_v19 }
0x14ff   :  { %2579 = vmatpush3.bf16.msra.mxu1 %v3058_v31  ;;  %2580 = vmatprep.mubr.msk.bf16.mxu1 %vm2749_vm1, %v2748_v15 }
0x1500   :  { %2604 = vmatprep.subr.bf16.mxu1 %v2748_v15 }
0x150a   :  { %2581 = vmatmul.mubr.msk.bf16.vlgmr.msra.gmra.mrb[40].mxu1 %vm252_vm2, %v1680_v25 }
0x150b   :  { %2608 = vmatprep.mubr.msk.bf16.mxu1 %vm2749_vm1, %v2748_v15 }
0x15dd   :  { %v1874_v26 = vpop.f32.mrb[40].mxu1 }
0x15de   :  { %1880 = vst.msk [vmem:[#allocation2 + $0x8] sm:$0xff] %vm131_vm0, %v1874_v26  ;;  %v2582_v2 = vpop.f32.mrb[41].mxu1 }
0x15df   :  { %v1877_v28 = vpop.f32.mrb[42].mxu1 }
0x15e0   :  { %v2583_v29 = vpop.f32.mrb[43].mxu1 }
0x15e1   :  { %v2319_v29 = vld [vmem:[%s2253_s23] ss:$0 sm:$0xff] }
0x15e5   :  { %v1882_v31 = vld [vmem:[#allocation2 + $0x8] sm:$0xff] }
0x15e6   :  { %v1891_v34 = vadd.f32 %v2312_v59, %v1882_v31  ;;  %v2314_v59 = vld [vmem:[%s2249_s13] ss:$0 sm:$0xff] }
0x15e8   :  { %v1893_v35 = vadd.f32 %v1891_v34, %v2999_v23  ;;  %v2679_v23 = vld [vmem:[%s2250_s5] sm:$0xff]  }
0x15e9   :  { %2585 = vmatpush3.bf16.msra.mxu0 %v2679_v23 }
0x15ea   :  { %v1899_v37 = vsel %vm131_vm0, %v1893_v35, 0.0  ;;  %2586 = vmatprep.subr.bf16.mxu0 %v2748_v15 }
0x15eb   :  { %1900 = vadd.xlane.f32.xlu0 %v1899_v37 }
0x15ed   :  { %2587 = vmatpush3.bf16.msra.mxu0 %v2680_v46 }
0x15ee   :  { %2592 = vmatprep.subr.bf16.mxu0 %v2748_v15 }
0x15ef   :  { %1909 = vadd.xlane.f32.xlu0 %v1908_v39 }
0x1678   :  { %v1901_v40 = vpop.xlane.xlu0 %1900 }
0x1679   :  { %v1903_v41 = vmul.f32 0.03125, %v1901_v40 }
0x167b   :  { %v1905_v43 = vsub.f32 %v1893_v35, %v1903_v41 }
0x167c   :  { %v1910_v47 = vpop.xlane.xlu0 %1909 }
0x167d   :  { %v1907_v44 = vmul.f32 %v1905_v43, %v1905_v43  ;;  %v1914_v49 = vmul.f32 0.03125, %v1910_v47 }
0x167f   :  { %v1911_v45 = vsel %vm131_vm0, %v1907_v44, 0.0  ;;  %v1916_v36 = vadd.f32 1e-12, %v1914_v49 }
0x1680   :  { %1912 = vadd.xlane.f32.xlu1 %v1911_v45 }
0x1681   :  { %2735 = vrsqrt.f32 %v1916_v36 }
0x168b   :  { %v2736_v55 = vpop.eup %2735 }
0x168c   :  { %v1920_v48 = vmul.f32 %v2736_v55, %v1904_v33  ;;  %v2686_v55 = vld [vmem:[%s2256_s1 + $0x8] sm:$0xff]  }
0x168e   :  { %v1928_v58 = vmul.f32 %v2313_v56, %v1920_v48 }
0x1690   :  { %v1936_v32 = vadd.f32 %v2314_v59, %v1928_v58 }
0x170d   :  { %v1913_v52 = vpop.xlane.xlu1 %1912 }
0x170e   :  { %v1915_v53 = vmul.f32 0.03125, %v1913_v52 }
0x1710   :  { %v1917_v54 = vadd.f32 1e-12, %v1915_v53 }
0x1712   :  { %2737 = vrsqrt.f32 %v1917_v54  ;;  %v2685_v54 = vld [vmem:[%s2256_s1] sm:$0xff]  }
0x1713   :  { %2605 = vmatpush3.bf16.msra.mxu1 %v2685_v54 }
0x1714   :  { %2606 = vmatprep.subr.bf16.mxu1 %v2748_v15 }
0x1717   :  { %2607 = vmatpush3.bf16.msra.mxu1 %v2686_v55 }
0x171c   :  { %v2738_v57 = vpop.eup %2737 }
0x171d   :  { %v1921_v51 = vmul.f32 %v2738_v57, %v1905_v43 }
0x171f   :  { %v1929_v60 = vmul.f32 %v2313_v56, %v1921_v51 }
0x1721   :  { %v1937_v61 = vadd.f32 %v2314_v59, %v1929_v60  ;;  %v2325_v60 = vld [vmem:[%s2254_s30] ss:$0 sm:$0xff] }
0x1723   :  { %v1938_v42 = vpack.c.bf16 %v1937_v61, %v1936_v32 }
0x1725   :  { %2589 = vmatmul.mubr.msk.bf16.vlgmr.msra.gmra.mrb[52].mxu0 %vm131_vm0, %v1938_v42 }
0x1726   :  { %2600 = vmatprep.mubr.msk.bf16.mxu0 %vm2749_vm1, %v2748_v15  ;;  %2593 = vmatpush3.bf16.msra.mxu0 %v2681_v62 }
0x1727   :  { %2594 = vmatprep.subr.bf16.mxu0 %v2748_v15 }
0x172a   :  { %2595 = vmatpush3.bf16.msra.mxu0 %v2682_v63  ;;  %v2326_v63 = vld [vmem:[%s2255_s7] ss:$0 sm:$0xff] }
0x172b   :  { %2596 = vmatprep.subr.bf16.mxu0 %v2748_v15 }
0x172e   :  { %2597 = vmatpush3.bf16.msra.mxu0 %v2683_v0 }
0x172f   :  { %2598 = vmatprep.subr.bf16.mxu0 %v2748_v15 }
0x1732   :  { %2599 = vmatpush3.bf16.msra.mxu0 %v2684_v1 }
0x17f8   :  { %v1999_v4 = vpop.f32.mrb[52].mxu0 }
0x17f9   :  { %v2000_v5 = vadd.f32 %v2315_v3, %v1999_v4  ;;  %v2590_v22 = vpop.f32.mrb[53].mxu0 }
0x17fa   :  { %v2002_v6 = vpop.f32.mrb[54].mxu0 }
0x17fb   :  { %v2008_v7 = vmul.f32 0.044715, %v2000_v5  ;;  %v2003_v8 = vadd.f32 %v2315_v3, %v2002_v6  ;;  %v2591_v9 = vpop.f32.mrb[55].mxu0  ;;  %v2006_v24 = vmul.f32 0.5, %v2000_v5 }
0x17fd   :  { %v2010_v10 = vmul.f32 %v2008_v7, %v2000_v5  ;;  %v2009_v50 = vmul.f32 0.044715, %v2003_v8  ;;  %v2007_v25 = vmul.f32 0.5, %v2003_v8 }
0x17ff   :  { %v2012_v11 = vmul.f32 %v2010_v10, %v2000_v5  ;;  %v2011_v12 = vmul.f32 %v2009_v50, %v2003_v8 }
0x1801   :  { %v2014_v13 = vadd.f32 %v2012_v11, %v2000_v5  ;;  %v2013_v14 = vmul.f32 %v2011_v12, %v2003_v8  ;;  %v2327_v5 = vld [vmem:[%s2257_s11] ss:$0 sm:$0xff] }
0x1803   :  { %v2016_v16 = vmul.f32 0.7978846, %v2014_v13  ;;  %v2015_v17 = vadd.f32 %v2013_v14, %v2003_v8 }
0x1805   :  { %2739 = vtanh.f32 %v2016_v16  ;;  %v2017_v18 = vmul.f32 0.7978846, %v2015_v17 }
0x1807   :  { %2741 = vtanh.f32 %v2017_v18 }
0x180f   :  { %v2740_v19 = vpop.eup %2739 }
0x1810   :  { %v2020_v20 = vadd.f32 1.0, %v2740_v19 }
0x1811   :  { %v2742_v21 = vpop.eup %2741 }
0x1812   :  { %v2021_v26 = vadd.f32 1.0, %v2742_v21  ;;  %v2022_v2 = vmul.f32 %v2020_v20, %v2006_v24 }
0x1814   :  { %v2023_v27 = vmul.f32 %v2021_v26, %v2007_v25 }
0x1816   :  { %v2024_v28 = vpack.c.bf16 %v2023_v27, %v2022_v2 }
0x1818   :  { %2601 = vmatmul.mubr.msk.bf16.vlgmr.msra.gmra.mrb[56].mxu0 %vm1080_vm5, %v2024_v28 }
0x18eb   :  { %v2101_v30 = vpop.f32.mrb[56].mxu0 }
0x18ec   :  { %v2102_v31 = vadd.f32 %v2319_v29, %v2101_v30  ;;  %v2602_v33 = vpop.f32.mrb[57].mxu0 }
0x18ed   :  { %v2104_v34 = vpop.f32.mrb[58].mxu0 }
0x18ee   :  { %v2105_v35 = vadd.f32 %v2319_v29, %v2104_v34  ;;  %v2603_v37 = vpop.f32.mrb[59].mxu0  ;;  %v2108_v38 = vadd.f32 %v2102_v31, %v1936_v32 }
0x18f0   :  { %v2112_v39 = vsel %vm131_vm0, %v2108_v38, 0.0  ;;  %v2109_v40 = vadd.f32 %v2105_v35, %v1937_v61 }
0x18f1   :  { %2113 = vadd.xlane.f32.xlu0 %v2112_v39 }
0x18f2   :  { %v2115_v41 = vsel %vm131_vm0, %v2109_v40, 0.0 }
0x18f3   :  { %2116 = vadd.xlane.f32.xlu1 %v2115_v41 }
0x197e   :  { %v2114_v43 = vpop.xlane.xlu0 %2113 }
0x197f   :  { %v2118_v44 = vmul.f32 0.03125, %v2114_v43 }
0x1980   :  { %v2117_v45 = vpop.xlane.xlu1 %2116 }
0x1981   :  { %v2120_v23 = vsub.f32 %v2108_v38, %v2118_v44  ;;  %v2119_v46 = vmul.f32 0.03125, %v2117_v45 }
0x1983   :  { %v2121_v47 = vsub.f32 %v2109_v40, %v2119_v46  ;;  %v2122_v49 = vmul.f32 %v2120_v23, %v2120_v23 }
0x1985   :  { %v2124_v36 = vsel %vm131_vm0, %v2122_v49, 0.0  ;;  %v2123_v52 = vmul.f32 %v2121_v47, %v2121_v47 }
0x1986   :  { %2125 = vadd.xlane.f32.xlu0 %v2124_v36 }
0x1987   :  { %v2127_v53 = vsel %vm131_vm0, %v2123_v52, 0.0 }
0x1988   :  { %2128 = vadd.xlane.f32.xlu1 %v2127_v53 }
0x1a13   :  { %v2126_v48 = vpop.xlane.xlu0 %2125 }
0x1a14   :  { %v2130_v56 = vmul.f32 0.03125, %v2126_v48 }
0x1a15   :  { %v2129_v57 = vpop.xlane.xlu1 %2128 }
0x1a16   :  { %v2132_v58 = vadd.f32 1e-12, %v2130_v56  ;;  %v2131_v51 = vmul.f32 0.03125, %v2129_v57 }
0x1a18   :  { %2743 = vrsqrt.f32 %v2132_v58  ;;  %v2133_v59 = vadd.f32 1e-12, %v2131_v51 }
0x1a1a   :  { %2745 = vrsqrt.f32 %v2133_v59 }
0x1a22   :  { %v2744_v15 = vpop.eup %2743 }
0x1a23   :  { %v2136_v32 = vmul.f32 %v2744_v15, %v2120_v23 }
0x1a24   :  { %v2746_v61 = vpop.eup %2745 }
0x1a25   :  { %v2144_v42 = vmul.f32 %v2325_v60, %v2136_v32  ;;  %v2137_v62 = vmul.f32 %v2746_v61, %v2121_v47 }
0x1a27   :  { %v2145_v0 = vmul.f32 %v2325_v60, %v2137_v62  ;;  %v2152_v1 = vadd.f32 %v2326_v63, %v2144_v42 }
0x1a29   :  { %v2153_v3 = vadd.f32 %v2326_v63, %v2145_v0 }
0x1a2b   :  { %v2154_v4 = vpack.c.bf16 %v2153_v3, %v2152_v1 }
0x1a2d   :  { %2609 = vmatmul.mubr.msk.bf16.vlgmr.msra.gmra.mrb[44].mxu1 %vm131_vm0, %v2154_v4 }
0x1b00   :  { %v2215_v22 = vpop.f32.mrb[44].mxu1 }
0x1b01   :  { %v2216_v6 = vadd.f32 %v2327_v5, %v2215_v22  ;;  %v2610_v7 = vpop.f32.mrb[45].mxu1 }
0x1b02   :  { %v2218_v8 = vpop.f32.mrb[46].mxu1 }
0x1b03   :  { %2223 = vst.msk [vmem:[%s2258_s15] sm:$0x1] %vm2222_vm6, %v2216_v6  ;;  %v2219_v9 = vadd.f32 %v2327_v5, %v2218_v8  ;;  %v2611_v10 = vpop.f32.mrb[47].mxu1 }
0x1b05   :  { %2224 = vst.msk [vmem:[%s2258_s15 + $0x1] sm:$0x1] %vm2222_vm6, %v2219_v9 }

</bundles_post_ra>
